<compile_context>
chip_gen: v6e
topology: v6e:2x2x1
jax: 0.10.0
libtpu: 0.0.40
codegen_flags: <defaults>
</compile_context>

<pallas_src>
import jax
import jax.numpy as jnp
from jax.experimental import pallas as pl
from jax.experimental.pallas import tpu as pltpu


def prepare_head_params(weight, bias):
    """One-time prep of the nn.Linear params for the fused kernel.

    weight: (K, C_tot), bias: (K,).  Returns (w_pad, b_pad) with K zero-padded
    to a lane-dense multiple of 128; padded classes receive a -1e30 bias so
    exp() underflows to 0 and the softmax denominator is unaffected.
    """
    K, c_tot = weight.shape
    k_pad = ((K + 127) // 128) * 128
    w_pad = jnp.zeros((k_pad, c_tot), jnp.bfloat16)
    w_pad = w_pad.at[:K].set(weight.astype(jnp.bfloat16))
    b_pad = jnp.full((k_pad, 1), -1e30, jnp.float32)
    b_pad = b_pad.at[:K, 0].set(bias.astype(jnp.float32))
    return w_pad, b_pad


def _make_head_kernel(dims, offsets, thw_shapes, eff_pools, S, batch_tile, c_chunk):
    """Fused head kernel for one batch tile.

    dims[p]/offsets[p] : channels / channel offset of pathway p
    thw_shapes[p]      : (T, H, W) of pathway p
    eff_pools[p]       : (kt, kh, kw) stride-1 pool window (full extent == adaptive)
    S                  : To*Ho*Wo pooled positions (common across pathways)
    """
    n_path = len(dims)
    n_sel = n_path if S > 1 else 0
    inv_s = 1.0 / float(S)

    def kernel(*refs):
        x_refs = refs[:n_path]                   # (B_tile, C_p, T*H*W) per pathway
        sel_refs = refs[n_path:n_path + n_sel]   # (l3_p, S) bf16 0/1 gather matrices
        w_ref = refs[n_path + n_sel]             # (Kpad, C_tot) bf16
        b_ref = refs[n_path + n_sel + 1]         # (Kpad, 1) f32 (pad rows = -1e30)
        g_ref = refs[n_path + n_sel + 2]         # (B_tile, B_tile*S) bf16 0/1 groups
        o_ref = refs[n_path + n_sel + 3]         # (1, B_tile, Kpad) f32
        feat_ref = refs[n_path + n_sel + 4]      # (C_tot, B_tile*S) bf16 scratch

        # ---- pooling -> channel-concatenated bf16 feature slab ---------------
        for p in range(n_path):
            T, H, W = thw_shapes[p]
            kt, kh, kw = eff_pools[p]
            hw, thw = H * W, T * H * W
            full = (kt, kh, kw) == (T, H, W)     # AdaptiveAvgPool3d((1,1,1)) path
            inv_k = 1.0 / float(kt * kh * kw)
            c0, Cp = offsets[p], dims[p]
            for b in range(batch_tile):
                for cs in range(0, Cp, c_chunk):
                    ce = min(cs + c_chunk, Cp)
                    x = x_refs[p][b, cs:ce, :].astype(jnp.float32)   # (csz, T*H*W)
                    if full:
                        # single log-depth lane reduction instead of slice-adds
                        pooled = jnp.mean(x, axis=-1, keepdims=True)  # (csz, 1)
                        feat_ref[c0 + cs:c0 + ce, b * S:b * S + 1] = (
                            pooled.astype(feat_ref.dtype))
                    else:
                        # separable stride-1 window sums on the flat (t,h,w) axis
                        l1 = thw - (kw - 1)
                        s1 = x[:, 0:l1]
                        for dw in range(1, kw):
                            s1 = s1 + x[:, dw:dw + l1]
                        l2 = l1 - (kh - 1) * W
                        s2 = s1[:, 0:l2]
                        for dh in range(1, kh):
                            s2 = s2 + s1[:, dh * W:dh * W + l2]
                        l3 = l2 - (kt - 1) * hw
                        s3 = s2[:, 0:l3]
                        for dt in range(1, kt):
                            s3 = s3 + s2[:, dt * hw:dt * hw + l3]
                        pooled = (s3 * inv_k).astype(jnp.bfloat16)    # (csz, l3)
                        # gather the S valid window starts on the MXU — replaces
                        # the old width-Wo masked-store compaction loop.
                        gathered = jnp.dot(pooled, sel_refs[p][...],
                                           preferred_element_type=jnp.float32)
                        feat_ref[c0 + cs:c0 + ce, b * S:(b + 1) * S] = (
                            gathered.astype(feat_ref.dtype))

        # ---- projection (MXU bf16xbf16->f32), softmax over classes, mean -----
        logits = jnp.dot(w_ref[...], feat_ref[...],
                         preferred_element_type=jnp.float32)      # (Kpad, B_tile*S)
        logits = logits + b_ref[...]                              # pad classes -> -1e30
        m = jnp.max(logits, axis=0, keepdims=True)
        e = jnp.exp(logits - m)
        den = jnp.sum(e, axis=0, keepdims=True)
        probs = (e * pl.reciprocal(den, approx=True)).astype(jnp.bfloat16)
        # x.mean([1,2,3]) folded into an MXU matvec: 0/1 groups, 1/S in f32.
        res = jax.lax.dot_general(
            g_ref[...], probs,
            dimension_numbers=(((1,), (1,)), ((), ())),
            preferred_element_type=jnp.float32)                   # (B_tile, Kpad)
        o_ref[0] = (res * inv_s).astype(o_ref.dtype)

    return kernel


def resnet_basic_head_forward(inputs_ncthw, w_pad, b_pad, pool_sizes, num_classes,
                              *, batch_tile=None, channel_chunk=256):
    """Fused eval-mode ResNetBasicHead forward (act_func='softmax', dropout=0).

    inputs_ncthw: list of p arrays, each (N, C_p, T_p, H_p, W_p) (PyTorch NCTHW),
                  f32 or bf16 (bf16 recommended upstream to halve HBM reads).
    w_pad, b_pad: outputs of prepare_head_params (class dim padded to 128k).
    Returns (N, num_classes) float32.
    """
    n_path = len(inputs_ncthw)
    assert n_path == len(pool_sizes), "pathway dimensions are not consistent"
    N = int(inputs_ncthw[0].shape[0])
    dims = [int(x.shape[1]) for x in inputs_ncthw]
    offsets = [0]
    for c in dims[:-1]:
        offsets.append(offsets[-1] + c)
    c_tot = sum(dims)
    k_pad = int(w_pad.shape[0])
    assert w_pad.shape == (k_pad, c_tot) and k_pad % 128 == 0

    thw_shapes, eff_pools, out_dims_list = [], [], []
    for x, ps in zip(inputs_ncthw, pool_sizes):
        _, _, T, H, W = (int(d) for d in x.shape)
        if ps is None:                       # AdaptiveAvgPool3d((1,1,1))
            kt, kh, kw = T, H, W
        else:                                # nn.AvgPool3d(ps, stride=1)
            kt, kh, kw = ps
            assert kt <= T and kh <= H and kw <= W, "pool window exceeds input"
        thw_shapes.append((T, H, W))
        eff_pools.append((kt, kh, kw))
        out_dims_list.append((T - kt + 1, H - kh + 1, W - kw + 1))
    assert len(set(out_dims_list)) == 1, \
        "pathway pooled shapes must match for the channel concat"
    To, Ho, Wo = out_dims_list[0]
    S = To * Ho * Wo

    # Free, contiguous reshape: NCTHW -> (N, C, T*H*W).  No transpose, no copy.
    flat_inputs = [x.reshape(x.shape[0], x.shape[1], -1) for x in inputs_ncthw]

    # Static 0/1 selection matrices gathering the S valid window starts (MXU).
    sels = []
    if S > 1:
        for (T, H, W), (kt, kh, kw) in zip(thw_shapes, eff_pools):
            hw = H * W
            l3 = T * hw - (kw - 1) - (kh - 1) * W - (kt - 1) * hw
            idx = (jnp.arange(To)[:, None, None] * hw
                   + jnp.arange(Ho)[None, :, None] * W
                   + jnp.arange(Wo)[None, None, :]).reshape(-1)       # (S,)
            sel = jnp.zeros((l3, S), jnp.bfloat16).at[idx, jnp.arange(S)].set(1)
            sels.append(sel)

    # ---- batch tile selection + VMEM budgeting --------------------------------
    def est_vmem(bt):
        by = 0
        for x, c, (t, h, w) in zip(flat_inputs, dims, thw_shapes):
            by += 2 * bt * c * t * h * w * x.dtype.itemsize   # double-buffered inputs
        by += c_tot * bt * S * 2                              # bf16 feat scratch
        by += 2 * (k_pad * c_tot * 2 + k_pad * 4)             # weight + bias buffers
        by += 2 * sum(int(s.size) * 2 for s in sels)          # selection matrices
        by += 2 * bt * bt * S * 2                             # group matrix
        by += 2 * bt * k_pad * 4                              # output block
        by += 6 * k_pad * bt * S * 4                          # logits/exp/probs temps
        return by

    if batch_tile is None:
        want = -(-256 // S)                      # aim for ~256 RHS columns
        want = min(want, 128 if S == 1 else 32)  # bound in-kernel unrolling
        batch_tile = 1
        for d in range(1, N + 1):
            if N % d == 0 and d <= want:
                batch_tile = d
        while batch_tile > 1 and est_vmem(batch_tile) > 48 * 1024 * 1024:
            batch_tile -= 1
            while N % batch_tile:
                batch_tile -= 1
    assert N % batch_tile == 0
    nb = N // batch_tile

    # 0/1 group matrix for the spatial-mean matvec (1/S applied in-kernel, f32).
    rows = jnp.repeat(jnp.arange(batch_tile), S)
    cols = jnp.arange(batch_tile * S)
    group_mat = jnp.zeros((batch_tile, batch_tile * S), jnp.bfloat16
                          ).at[rows, cols].set(1)

    kernel = _make_head_kernel(dims, offsets, thw_shapes, eff_pools, S,
                               batch_tile, channel_chunk)

    in_specs = [
        pl.BlockSpec((batch_tile, c, t * h * w), lambda b: (b, 0, 0))
        for c, (t, h, w) in zip(dims, thw_shapes)
    ]
    in_specs += [pl.BlockSpec(tuple(int(d) for d in s.shape), lambda b: (0, 0))
                 for s in sels]
    in_specs += [
        pl.BlockSpec((k_pad, c_tot), lambda b: (0, 0)),               # weight (bf16)
        pl.BlockSpec((k_pad, 1), lambda b: (0, 0)),                   # bias   (f32)
        pl.BlockSpec((batch_tile, batch_tile * S), lambda b: (0, 0)),  # groups
    ]

    # vmem limit from actual block sizes (<=64 MiB so it is valid on v7x too).
    vmem_limit = int(min(64 * 1024 * 1024,
                         max(32 * 1024 * 1024, 2 * est_vmem(batch_tile))))

    out = pl.pallas_call(
        kernel,
        out_shape=jax.ShapeDtypeStruct((nb, batch_tile, k_pad), jnp.float32),
        grid=(nb,),
        in_specs=in_specs,
        out_specs=pl.BlockSpec((1, batch_tile, k_pad), lambda b: (b, 0, 0)),
        scratch_shapes=[pltpu.VMEM((c_tot, batch_tile * S), jnp.bfloat16)],
        compiler_params=pltpu.CompilerParams(
            dimension_semantics=("parallel",),
            vmem_limit_bytes=vmem_limit,
        ),
    )(*flat_inputs, *sels, w_pad, b_pad, group_mat)

    return out.reshape(N, k_pad)[:, :num_classes]


def reference_forward(inputs_ncthw, weight, bias, pool_sizes):
    """Pure-JAX f32 replica of the PyTorch eval-mode forward."""
    pool_out = []
    for x, ps in zip(inputs_ncthw, pool_sizes):
        if ps is None:
            p = jnp.mean(x, axis=(2, 3, 4), keepdims=True)
        else:
            kt, kh, kw = ps
            _, _, T, H, W = x.shape
            To, Ho, Wo = T - kt + 1, H - kh + 1, W - kw + 1
            acc = jnp.zeros(x.shape[:2] + (To, Ho, Wo), jnp.float32)
            for dt in range(kt):
                for dh in range(kh):
                    for dw in range(kw):
                        acc = acc + x[:, :, dt:dt + To, dh:dh + Ho, dw:dw + Wo]
            p = acc / float(kt * kh * kw)
        pool_out.append(p)
    x = jnp.concatenate(pool_out, axis=1)
    x = jnp.transpose(x, (0, 2, 3, 4, 1))
    x = x @ weight.T + bias
    x = jax.nn.softmax(x, axis=4)
    x = x.mean(axis=(1, 2, 3))
    return x.reshape(x.shape[0], -1)


if __name__ == "__main__":
    key = jax.random.PRNGKey(0)
    k1, k2, k3, k4 = jax.random.split(key, 4)

    # Two SlowFast-style pathways with different temporal extents but matching
    # pooled output shapes (required for the channel concat).
    dim_in = [4, 6]
    num_classes = 16
    N = 2
    x0 = jax.random.normal(k1, (N, dim_in[0], 4, 8, 8), jnp.float32)   # slow
    x1 = jax.random.normal(k2, (N, dim_in[1], 8, 8, 8), jnp.float32)   # fast
    weight = 0.1 * jax.random.normal(k3, (num_classes, sum(dim_in)), jnp.float32)
    bias = 0.1 * jax.random.normal(k4, (num_classes,), jnp.float32)

    w_pad, b_pad = prepare_head_params(weight, bias)   # one-time param prep

    # Case 1: stride-1 AvgPool3d, pooled output (3, 7, 7) per pathway.
    pools_a = [(2, 2, 2), (6, 2, 2)]
    out_a = jax.block_until_ready(
        resnet_basic_head_forward([x0, x1], w_pad, b_pad, pools_a, num_classes))
    ref_a = reference_forward([x0, x1], weight, bias, pools_a)
    assert out_a.shape == (N, num_classes), out_a.shape
    err_a = float(jnp.max(jnp.abs(out_a - ref_a)))
    assert err_a < 2e-3, err_a      # bf16 MXU + approx reciprocal vs f32 ref

    # Case 2: AdaptiveAvgPool3d((1,1,1)) / full-extent pooling (output 1x1x1).
    pools_b = [None, (8, 8, 8)]
    out_b = jax.block_until_ready(
        resnet_basic_head_forward([x0, x1], w_pad, b_pad, pools_b, num_classes))
    ref_b = reference_forward([x0, x1], weight, bias, pools_b)
    assert out_b.shape == (N, num_classes), out_b.shape
    err_b = float(jnp.max(jnp.abs(out_b - ref_b)))
    assert err_b < 2e-3, err_b

    print("KERNEL_OK")
</pallas_src>

<mosaic_0001>
module attributes {stable_mosaic.version = 11 : i64} {
  func.func @kernel(%arg0: i32, %arg1: memref<2x4x256xf32, #tpu.memory_space<vmem>>, %arg2: memref<2x6x512xf32, #tpu.memory_space<vmem>>, %arg3: memref<183x147xbf16, #tpu.memory_space<vmem>>, %arg4: memref<183x147xbf16, #tpu.memory_space<vmem>>, %arg5: memref<128x10xbf16, #tpu.memory_space<vmem>>, %arg6: memref<128x1xf32, #tpu.memory_space<vmem>>, %arg7: memref<2x294xbf16, #tpu.memory_space<vmem>>, %arg8: memref<1x2x128xf32, #tpu.memory_space<vmem>>, %arg9: memref<10x294xbf16, #tpu.memory_space<vmem>>) attributes {dimension_semantics = [#tpu.dimension_semantics<parallel>], iteration_bounds = array<i64: 1>, scalar_prefetch = 0 : i64, scratch_operands = 1 : i64, tpu.core_type = #tpu.core_type<tc>, window_params = [{transform_indices = @transform_0, window_bounds = array<i64: 2, 4, 256>}, {transform_indices = @transform_1, window_bounds = array<i64: 2, 6, 512>}, {pipeline_mode = #tpu.pipeline_mode<synchronous>, transform_indices = @transform_2, window_bounds = array<i64: 183, 147>}, {pipeline_mode = #tpu.pipeline_mode<synchronous>, transform_indices = @transform_3, window_bounds = array<i64: 183, 147>}, {pipeline_mode = #tpu.pipeline_mode<synchronous>, transform_indices = @transform_4, window_bounds = array<i64: 128, 10>}, {pipeline_mode = #tpu.pipeline_mode<synchronous>, transform_indices = @transform_5, window_bounds = array<i64: 128, 1>}, {pipeline_mode = #tpu.pipeline_mode<synchronous>, transform_indices = @transform_6, window_bounds = array<i64: 2, 294>}, {transform_indices = @transform_7, window_bounds = array<i64: 1, 2, 128>}]} {
    %c0 = arith.constant 0 : index
    %c0_0 = arith.constant 0 : index
    %c0_1 = arith.constant 0 : index
    %0 = vector.load %arg1[%c0, %c0_0, %c0_1] : memref<2x4x256xf32, #tpu.memory_space<vmem>>, vector<1x4x256xf32>
    %1 = vector.shape_cast %0 : vector<1x4x256xf32> to vector<4x256xf32>
    %2 = vector.extract_strided_slice %1 {offsets = [0, 0], sizes = [4, 255], strides = [1, 1]} : vector<4x256xf32> to vector<4x255xf32>
    %3 = vector.extract_strided_slice %1 {offsets = [0, 1], sizes = [4, 255], strides = [1, 1]} : vector<4x256xf32> to vector<4x255xf32>
    %4 = arith.addf %2, %3 : vector<4x255xf32>
    %5 = vector.extract_strided_slice %4 {offsets = [0, 0], sizes = [4, 247], strides = [1, 1]} : vector<4x255xf32> to vector<4x247xf32>
    %6 = vector.extract_strided_slice %4 {offsets = [0, 8], sizes = [4, 247], strides = [1, 1]} : vector<4x255xf32> to vector<4x247xf32>
    %7 = arith.addf %5, %6 : vector<4x247xf32>
    %8 = vector.extract_strided_slice %7 {offsets = [0, 0], sizes = [4, 183], strides = [1, 1]} : vector<4x247xf32> to vector<4x183xf32>
    %9 = vector.extract_strided_slice %7 {offsets = [0, 64], sizes = [4, 183], strides = [1, 1]} : vector<4x247xf32> to vector<4x183xf32>
    %10 = arith.addf %8, %9 : vector<4x183xf32>
    %cst = arith.constant 1.250000e-01 : f32
    %11 = vector.broadcast %cst : f32 to vector<4x183xf32>
    %12 = arith.mulf %10, %11 : vector<4x183xf32>
    %13 = arith.truncf %12 : vector<4x183xf32> to vector<4x183xbf16>
    %c0_2 = arith.constant 0 : index
    %c0_3 = arith.constant 0 : index
    %14 = vector.load %arg3[%c0_2, %c0_3] : memref<183x147xbf16, #tpu.memory_space<vmem>>, vector<183x147xbf16>
    %cst_4 = arith.constant dense<0.000000e+00> : vector<4x147xf32>
    %15 = tpu.matmul %13, %14, %cst_4 {dimension_numbers = #tpu.dot_dimension_numbers<[1], [0], [0], [1], [0, 0, 1, 1], [], []>} : vector<4x183xbf16>, vector<183x147xbf16>, vector<4x147xf32> -> vector<4x147xf32>
    %16 = arith.truncf %15 : vector<4x147xf32> to vector<4x147xbf16>
    %c0_5 = arith.constant 0 : index
    %c0_6 = arith.constant 0 : index
    %17 = vector.load %arg9[%c0_5, %c0_6] : memref<10x294xbf16, #tpu.memory_space<vmem>>, vector<4x147xbf16>
    tpu.vector_store %arg9[%c0_5, %c0_6], %16 {strides = array<i32>} : memref<10x294xbf16, #tpu.memory_space<vmem>>, vector<4x147xbf16>,
    %c1 = arith.constant 1 : index
    %c0_7 = arith.constant 0 : index
    %c0_8 = arith.constant 0 : index
    %18 = vector.load %arg1[%c1, %c0_7, %c0_8] : memref<2x4x256xf32, #tpu.memory_space<vmem>>, vector<1x4x256xf32>
    %19 = vector.shape_cast %18 : vector<1x4x256xf32> to vector<4x256xf32>
    %20 = vector.extract_strided_slice %19 {offsets = [0, 0], sizes = [4, 255], strides = [1, 1]} : vector<4x256xf32> to vector<4x255xf32>
    %21 = vector.extract_strided_slice %19 {offsets = [0, 1], sizes = [4, 255], strides = [1, 1]} : vector<4x256xf32> to vector<4x255xf32>
    %22 = arith.addf %20, %21 : vector<4x255xf32>
    %23 = vector.extract_strided_slice %22 {offsets = [0, 0], sizes = [4, 247], strides = [1, 1]} : vector<4x255xf32> to vector<4x247xf32>
    %24 = vector.extract_strided_slice %22 {offsets = [0, 8], sizes = [4, 247], strides = [1, 1]} : vector<4x255xf32> to vector<4x247xf32>
    %25 = arith.addf %23, %24 : vector<4x247xf32>
    %26 = vector.extract_strided_slice %25 {offsets = [0, 0], sizes = [4, 183], strides = [1, 1]} : vector<4x247xf32> to vector<4x183xf32>
    %27 = vector.extract_strided_slice %25 {offsets = [0, 64], sizes = [4, 183], strides = [1, 1]} : vector<4x247xf32> to vector<4x183xf32>
    %28 = arith.addf %26, %27 : vector<4x183xf32>
    %cst_9 = arith.constant 1.250000e-01 : f32
    %29 = vector.broadcast %cst_9 : f32 to vector<4x183xf32>
    %30 = arith.mulf %28, %29 : vector<4x183xf32>
    %31 = arith.truncf %30 : vector<4x183xf32> to vector<4x183xbf16>
    %c0_10 = arith.constant 0 : index
    %c0_11 = arith.constant 0 : index
    %32 = vector.load %arg3[%c0_10, %c0_11] : memref<183x147xbf16, #tpu.memory_space<vmem>>, vector<183x147xbf16>
    %cst_12 = arith.constant dense<0.000000e+00> : vector<4x147xf32>
    %33 = tpu.matmul %31, %32, %cst_12 {dimension_numbers = #tpu.dot_dimension_numbers<[1], [0], [0], [1], [0, 0, 1, 1], [], []>} : vector<4x183xbf16>, vector<183x147xbf16>, vector<4x147xf32> -> vector<4x147xf32>
    %34 = arith.truncf %33 : vector<4x147xf32> to vector<4x147xbf16>
    %c0_13 = arith.constant 0 : index
    %c147 = arith.constant 147 : index
    %35 = vector.load %arg9[%c0_13, %c147] : memref<10x294xbf16, #tpu.memory_space<vmem>>, vector<4x147xbf16>
    tpu.vector_store %arg9[%c0_13, %c147], %34 {strides = array<i32>} : memref<10x294xbf16, #tpu.memory_space<vmem>>, vector<4x147xbf16>,
    %c0_14 = arith.constant 0 : index
    %c0_15 = arith.constant 0 : index
    %c0_16 = arith.constant 0 : index
    %36 = vector.load %arg2[%c0_14, %c0_15, %c0_16] : memref<2x6x512xf32, #tpu.memory_space<vmem>>, vector<1x6x512xf32>
    %37 = vector.shape_cast %36 : vector<1x6x512xf32> to vector<6x512xf32>
    %38 = vector.extract_strided_slice %37 {offsets = [0, 0], sizes = [6, 511], strides = [1, 1]} : vector<6x512xf32> to vector<6x511xf32>
    %39 = vector.extract_strided_slice %37 {offsets = [0, 1], sizes = [6, 511], strides = [1, 1]} : vector<6x512xf32> to vector<6x511xf32>
    %40 = arith.addf %38, %39 : vector<6x511xf32>
    %41 = vector.extract_strided_slice %40 {offsets = [0, 0], sizes = [6, 503], strides = [1, 1]} : vector<6x511xf32> to vector<6x503xf32>
    %42 = vector.extract_strided_slice %40 {offsets = [0, 8], sizes = [6, 503], strides = [1, 1]} : vector<6x511xf32> to vector<6x503xf32>
    %43 = arith.addf %41, %42 : vector<6x503xf32>
    %44 = vector.extract_strided_slice %43 {offsets = [0, 0], sizes = [6, 183], strides = [1, 1]} : vector<6x503xf32> to vector<6x183xf32>
    %45 = vector.extract_strided_slice %43 {offsets = [0, 64], sizes = [6, 183], strides = [1, 1]} : vector<6x503xf32> to vector<6x183xf32>
    %46 = arith.addf %44, %45 : vector<6x183xf32>
    %47 = vector.extract_strided_slice %43 {offsets = [0, 128], sizes = [6, 183], strides = [1, 1]} : vector<6x503xf32> to vector<6x183xf32>
    %48 = arith.addf %46, %47 : vector<6x183xf32>
    %49 = vector.extract_strided_slice %43 {offsets = [0, 192], sizes = [6, 183], strides = [1, 1]} : vector<6x503xf32> to vector<6x183xf32>
    %50 = arith.addf %48, %49 : vector<6x183xf32>
    %51 = vector.extract_strided_slice %43 {offsets = [0, 256], sizes = [6, 183], strides = [1, 1]} : vector<6x503xf32> to vector<6x183xf32>
    %52 = arith.addf %50, %51 : vector<6x183xf32>
    %53 = vector.extract_strided_slice %43 {offsets = [0, 320], sizes = [6, 183], strides = [1, 1]} : vector<6x503xf32> to vector<6x183xf32>
    %54 = arith.addf %52, %53 : vector<6x183xf32>
    %cst_17 = arith.constant 0.0416666679 : f32
    %55 = vector.broadcast %cst_17 : f32 to vector<6x183xf32>
    %56 = arith.mulf %54, %55 : vector<6x183xf32>
    %57 = arith.truncf %56 : vector<6x183xf32> to vector<6x183xbf16>
    %c0_18 = arith.constant 0 : index
    %c0_19 = arith.constant 0 : index
    %58 = vector.load %arg4[%c0_18, %c0_19] : memref<183x147xbf16, #tpu.memory_space<vmem>>, vector<183x147xbf16>
    %cst_20 = arith.constant dense<0.000000e+00> : vector<6x147xf32>
    %59 = tpu.matmul %57, %58, %cst_20 {dimension_numbers = #tpu.dot_dimension_numbers<[1], [0], [0], [1], [0, 0, 1, 1], [], []>} : vector<6x183xbf16>, vector<183x147xbf16>, vector<6x147xf32> -> vector<6x147xf32>
    %60 = arith.truncf %59 : vector<6x147xf32> to vector<6x147xbf16>
    %c4 = arith.constant 4 : index
    %c0_21 = arith.constant 0 : index
    %61 = vector.load %arg9[%c4, %c0_21] : memref<10x294xbf16, #tpu.memory_space<vmem>>, vector<6x147xbf16>
    tpu.vector_store %arg9[%c4, %c0_21], %60 {strides = array<i32>} : memref<10x294xbf16, #tpu.memory_space<vmem>>, vector<6x147xbf16>,
    %c1_22 = arith.constant 1 : index
    %c0_23 = arith.constant 0 : index
    %c0_24 = arith.constant 0 : index
    %62 = vector.load %arg2[%c1_22, %c0_23, %c0_24] : memref<2x6x512xf32, #tpu.memory_space<vmem>>, vector<1x6x512xf32>
    %63 = vector.shape_cast %62 : vector<1x6x512xf32> to vector<6x512xf32>
    %64 = vector.extract_strided_slice %63 {offsets = [0, 0], sizes = [6, 511], strides = [1, 1]} : vector<6x512xf32> to vector<6x511xf32>
    %65 = vector.extract_strided_slice %63 {offsets = [0, 1], sizes = [6, 511], strides = [1, 1]} : vector<6x512xf32> to vector<6x511xf32>
    %66 = arith.addf %64, %65 : vector<6x511xf32>
    %67 = vector.extract_strided_slice %66 {offsets = [0, 0], sizes = [6, 503], strides = [1, 1]} : vector<6x511xf32> to vector<6x503xf32>
    %68 = vector.extract_strided_slice %66 {offsets = [0, 8], sizes = [6, 503], strides = [1, 1]} : vector<6x511xf32> to vector<6x503xf32>
    %69 = arith.addf %67, %68 : vector<6x503xf32>
    %70 = vector.extract_strided_slice %69 {offsets = [0, 0], sizes = [6, 183], strides = [1, 1]} : vector<6x503xf32> to vector<6x183xf32>
    %71 = vector.extract_strided_slice %69 {offsets = [0, 64], sizes = [6, 183], strides = [1, 1]} : vector<6x503xf32> to vector<6x183xf32>
    %72 = arith.addf %70, %71 : vector<6x183xf32>
    %73 = vector.extract_strided_slice %69 {offsets = [0, 128], sizes = [6, 183], strides = [1, 1]} : vector<6x503xf32> to vector<6x183xf32>
    %74 = arith.addf %72, %73 : vector<6x183xf32>
    %75 = vector.extract_strided_slice %69 {offsets = [0, 192], sizes = [6, 183], strides = [1, 1]} : vector<6x503xf32> to vector<6x183xf32>
    %76 = arith.addf %74, %75 : vector<6x183xf32>
    %77 = vector.extract_strided_slice %69 {offsets = [0, 256], sizes = [6, 183], strides = [1, 1]} : vector<6x503xf32> to vector<6x183xf32>
    %78 = arith.addf %76, %77 : vector<6x183xf32>
    %79 = vector.extract_strided_slice %69 {offsets = [0, 320], sizes = [6, 183], strides = [1, 1]} : vector<6x503xf32> to vector<6x183xf32>
    %80 = arith.addf %78, %79 : vector<6x183xf32>
    %cst_25 = arith.constant 0.0416666679 : f32
    %81 = vector.broadcast %cst_25 : f32 to vector<6x183xf32>
    %82 = arith.mulf %80, %81 : vector<6x183xf32>
    %83 = arith.truncf %82 : vector<6x183xf32> to vector<6x183xbf16>
    %c0_26 = arith.constant 0 : index
    %c0_27 = arith.constant 0 : index
    %84 = vector.load %arg4[%c0_26, %c0_27] : memref<183x147xbf16, #tpu.memory_space<vmem>>, vector<183x147xbf16>
    %cst_28 = arith.constant dense<0.000000e+00> : vector<6x147xf32>
    %85 = tpu.matmul %83, %84, %cst_28 {dimension_numbers = #tpu.dot_dimension_numbers<[1], [0], [0], [1], [0, 0, 1, 1], [], []>} : vector<6x183xbf16>, vector<183x147xbf16>, vector<6x147xf32> -> vector<6x147xf32>
    %86 = arith.truncf %85 : vector<6x147xf32> to vector<6x147xbf16>
    %c4_29 = arith.constant 4 : index
    %c147_30 = arith.constant 147 : index
    %87 = vector.load %arg9[%c4_29, %c147_30] : memref<10x294xbf16, #tpu.memory_space<vmem>>, vector<6x147xbf16>
    tpu.vector_store %arg9[%c4_29, %c147_30], %86 {strides = array<i32>} : memref<10x294xbf16, #tpu.memory_space<vmem>>, vector<6x147xbf16>,
    %c0_31 = arith.constant 0 : index
    %c0_32 = arith.constant 0 : index
    %88 = vector.load %arg5[%c0_31, %c0_32] : memref<128x10xbf16, #tpu.memory_space<vmem>>, vector<128x10xbf16>
    %c0_33 = arith.constant 0 : index
    %c0_34 = arith.constant 0 : index
    %89 = vector.load %arg9[%c0_33, %c0_34] : memref<10x294xbf16, #tpu.memory_space<vmem>>, vector<10x294xbf16>
    %cst_35 = arith.constant dense<0.000000e+00> : vector<128x294xf32>
    %90 = tpu.matmul %88, %89, %cst_35 {dimension_numbers = #tpu.dot_dimension_numbers<[1], [0], [0], [1], [0, 0, 1, 1], [], []>} : vector<128x10xbf16>, vector<10x294xbf16>, vector<128x294xf32> -> vector<128x294xf32>
    %c0_36 = arith.constant 0 : index
    %c0_37 = arith.constant 0 : index
    %91 = vector.load %arg6[%c0_36, %c0_37] : memref<128x1xf32, #tpu.memory_space<vmem>>, vector<128x1xf32>
    %92 = vector.broadcast %91 : vector<128x1xf32> to vector<128x294xf32>
    %93 = arith.addf %90, %92 : vector<128x294xf32>
    %cst_38 = arith.constant dense<0xFF800000> : vector<294xf32>
    %94 = vector.multi_reduction <maximumf>, %93, %cst_38 [0] : vector<128x294xf32> to vector<294xf32>
    %95 = vector.shape_cast %94 : vector<294xf32> to vector<1x294xf32>
    %96 = vector.broadcast %95 : vector<1x294xf32> to vector<128x294xf32>
    %97 = arith.subf %93, %96 : vector<128x294xf32>
    %98 = math.exp %97 : vector<128x294xf32>
    %cst_39 = arith.constant dense<0.000000e+00> : vector<294xf32>
    %99 = vector.multi_reduction <add>, %98, %cst_39 [0] : vector<128x294xf32> to vector<294xf32>
    %100 = vector.shape_cast %99 : vector<294xf32> to vector<1x294xf32>
    %101 = tpu.reciprocal %100 {approx = true} : vector<1x294xf32> -> vector<1x294xf32>
    %102 = vector.broadcast %101 : vector<1x294xf32> to vector<128x294xf32>
    %103 = arith.mulf %98, %102 : vector<128x294xf32>
    %104 = arith.truncf %103 : vector<128x294xf32> to vector<128x294xbf16>
    %c0_40 = arith.constant 0 : index
    %c0_41 = arith.constant 0 : index
    %105 = vector.load %arg7[%c0_40, %c0_41] : memref<2x294xbf16, #tpu.memory_space<vmem>>, vector<2x294xbf16>
    %cst_42 = arith.constant dense<0.000000e+00> : vector<2x128xf32>
    %106 = tpu.matmul %105, %104, %cst_42 {dimension_numbers = #tpu.dot_dimension_numbers<[1], [1], [0], [0], [0, 0, 1, 0], [], []>} : vector<2x294xbf16>, vector<128x294xbf16>, vector<2x128xf32> -> vector<2x128xf32>
    %cst_43 = arith.constant 0.00680272094 : f32
    %107 = vector.broadcast %cst_43 : f32 to vector<2x128xf32>
    %108 = arith.mulf %106, %107 : vector<2x128xf32>
    %c0_44 = arith.constant 0 : index
    %c0_45 = arith.constant 0 : index
    %c0_46 = arith.constant 0 : index
    %109 = vector.load %arg8[%c0_44, %c0_45, %c0_46] : memref<1x2x128xf32, #tpu.memory_space<vmem>>, vector<1x2x128xf32>
    %110 = vector.shape_cast %109 : vector<1x2x128xf32> to vector<2x128xf32>
    %111 = vector.shape_cast %108 : vector<2x128xf32> to vector<1x2x128xf32>
    tpu.vector_store %arg8[%c0_44, %c0_45, %c0_46], %111 {strides = array<i32>} : memref<1x2x128xf32, #tpu.memory_space<vmem>>, vector<1x2x128xf32>,
    return
  }
  func.func @transform_0(%arg0: i32) -> (i32, i32, i32) {
    %c0_i32 = arith.constant 0 : i32
    %c0_i32_0 = arith.constant 0 : i32
    %c0_i32_1 = arith.constant 0 : i32
    return %arg0, %c0_i32, %c0_i32_0 : i32, i32, i32
  }
  func.func @transform_1(%arg0: i32) -> (i32, i32, i32) {
    %c0_i32 = arith.constant 0 : i32
    %c0_i32_0 = arith.constant 0 : i32
    %c0_i32_1 = arith.constant 0 : i32
    return %arg0, %c0_i32, %c0_i32_0 : i32, i32, i32
  }
  func.func @transform_2(%arg0: i32) -> (i32, i32) {
    %c0_i32 = arith.constant 0 : i32
    %c0_i32_0 = arith.constant 0 : i32
    %c0_i32_1 = arith.constant 0 : i32
    return %c0_i32, %c0_i32_0 : i32, i32
  }
  func.func @transform_3(%arg0: i32) -> (i32, i32) {
    %c0_i32 = arith.constant 0 : i32
    %c0_i32_0 = arith.constant 0 : i32
    %c0_i32_1 = arith.constant 0 : i32
    return %c0_i32, %c0_i32_0 : i32, i32
  }
  func.func @transform_4(%arg0: i32) -> (i32, i32) {
    %c0_i32 = arith.constant 0 : i32
    %c0_i32_0 = arith.constant 0 : i32
    %c0_i32_1 = arith.constant 0 : i32
    return %c0_i32, %c0_i32_0 : i32, i32
  }
  func.func @transform_5(%arg0: i32) -> (i32, i32) {
    %c0_i32 = arith.constant 0 : i32
    %c0_i32_0 = arith.constant 0 : i32
    %c0_i32_1 = arith.constant 0 : i32
    return %c0_i32, %c0_i32_0 : i32, i32
  }
  func.func @transform_6(%arg0: i32) -> (i32, i32) {
    %c0_i32 = arith.constant 0 : i32
    %c0_i32_0 = arith.constant 0 : i32
    %c0_i32_1 = arith.constant 0 : i32
    return %c0_i32, %c0_i32_0 : i32, i32
  }
  func.func @transform_7(%arg0: i32) -> (i32, i32, i32) {
    %c0_i32 = arith.constant 0 : i32
    %c0_i32_0 = arith.constant 0 : i32
    %c0_i32_1 = arith.constant 0 : i32
    return %arg0, %c0_i32, %c0_i32_0 : i32, i32, i32
  }
}

</mosaic_0001>

<bundles_post_ra>
// kernel: tpu_custom_call.1
= control target key start
LH: loop header
LB: loop body
LE: loop exit
PB: predicated region body
PF: predicated region fallthrough
CT: control target
= control target key end

     0   :  { %s2451_s28 = smov 127   ;;  %s3598_s0 = inlined_call_operand.vmem [shape: f32[2,4,256], index: 0, kind: input, shape index: {}]   ;;  %s3599_s1 = inlined_call_operand.vmem [shape: f32[2,6,512], index: 1, kind: input, shape index: {}]   ;;  %s3600_s2 = inlined_call_operand.vmem [shape: bf16[183,147], index: 2, kind: input, shape index: {}]   ;;  %s3601_s3 = inlined_call_operand.vmem [shape: bf16[183,147], index: 3, kind: input, shape index: {}]   ;;  %s3602_s4 = inlined_call_operand.vmem [shape: bf16[128,10], index: 4, kind: input, shape index: {}]   ;;  %s3603_s5 = inlined_call_operand.vmem [shape: f32[128,1], index: 5, kind: input, shape index: {}]   ;;  %s3604_s6 = inlined_call_operand.vmem [shape: bf16[2,294], index: 6, kind: input, shape index: {}]   ;;  %s3605_s7 = inlined_call_operand.hbm [shape: f32[1,2,128], index: 7, kind: output, shape index: {}]  }
   0x1   :  { %v2059_v0 = vld [vmem:[%s3598_s0 + $0x8] sm:$0xff]  ;;  %v2112_v2 = vld [vmem:[%s3599_s1 + $0x20] sm:$0x3f]  ;;  %v2114_v3 = vld [vmem:[%s3599_s1 + $0x30] sm:$0x3f] }
   0x2   :  { %v2113_v1 = vld [vmem:[%s3599_s1 + $0x28] sm:$0x3f]  ;;  %267 = vrot.lane.b32.xlu0 %v2059_v0, %s2451_s28  ;;  %v2115_v4 = vld [vmem:[%s3599_s1 + $0x38] sm:$0x3f]  ;;  %v28_v5 = vld [vmem:[%s3598_s0] sm:$0xff] }
   0x3   :  { %801 = vrot.lane.b32.xlu1 %v2113_v1, %s2451_s28  ;;  %v2526_v6 = vld [vmem:[%s3599_s1] sm:$0x3f]  ;;  %v2533_v7 = vld [vmem:[%s3599_s1 + $0x10] sm:$0x3f] }
   0x6   :  { %799 = vrot.lane.b32.xlu0 %v2112_v2, %s2451_s28 }
   0x7   :  { %803 = vrot.lane.b32.xlu1 %v2114_v3, %s2451_s28 }
   0xa   :  { %805 = vrot.lane.b32.xlu0 %v2115_v4, %s2451_s28 }
   0xb   :  { %30 = vrot.lane.b32.xlu1 %v28_v5, %s2451_s28 }
   0xf   :  { %506 = vrot.lane.b32.xlu1 %v2526_v6, %s2451_s28 }
  0x13   :  { %510 = vrot.lane.b32.xlu1 %v2533_v7, %s2451_s28 }
  0x14   :  { %12 = vsyncpa [#allocation4], 0  ;;  %vm33_vm0 = vcmask 1039360   ;;  %s2452_s0 = smov 120   ;;  %v2550_v17 = vld [vmem:[%s3599_s1 + $0x8] sm:$0x3f] }
  0x15   :  { %v2564_v25 = vld [vmem:[%s3599_s1 + $0x18] sm:$0x3f]  ;;  %v2248_v30 = vld [vmem:[%s3600_s2 + $0x64] ss:$8 sps:$4 sm:$0xff]   ;;  %v2250_v32 = vld [vmem:[%s3600_s2 + $0x60] ss:$8 sps:$4 sm:$0xff]  }
  0x16   :  { %v2245_v28 = vld [vmem:[%s3600_s2 + $0x74] ss:$8 sps:$4 sm:$0xff]   ;;  %v2247_v29 = vld [vmem:[%s3600_s2 + $0x70] ss:$8 sps:$4 sm:$0xff]   ;;  %v2254_v35 = vld [vmem:[%s3600_s2 + $0x44] ss:$8 sps:$4 sm:$0xff]  }
  0x17   :  { %440 = vmatprep.subr.bf16.mxu1 %v2245_v28  ;;  %211 = vmatprep.subr.bf16.mxu0 %v2245_v28  ;;  %v2251_v33 = vld [vmem:[%s3600_s2 + $0x54] ss:$8 sps:$4 sm:$0xff]   ;;  %v2253_v34 = vld [vmem:[%s3600_s2 + $0x50] ss:$8 sps:$4 sm:$0xff]   ;;  %v2256_v36 = vld [vmem:[%s3600_s2 + $0x40] ss:$8 sps:$4 sm:$0xff]  }
  0x18   :  { %441 = vmatpush1.bf16.msra.mxu1 %v2247_v29  ;;  %212 = vmatpush1.bf16.msra.mxu0 %v2247_v29  ;;  %v2257_v37 = vld [vmem:[%s3600_s2 + $0x34] ss:$8 sps:$4 sm:$0xff]   ;;  %v2259_v38 = vld [vmem:[%s3600_s2 + $0x30] ss:$8 sps:$4 sm:$0xff]   ;;  %v2260_v39 = vld [vmem:[%s3600_s2 + $0x24] ss:$8 sps:$4 sm:$0xff]  }
  0x19   :  { %442 = vmatprep.subr.bf16.mxu1 %v2248_v30  ;;  %213 = vmatprep.subr.bf16.mxu0 %v2248_v30  ;;  %v2262_v40 = vld [vmem:[%s3600_s2 + $0x20] ss:$8 sps:$4 sm:$0xff]   ;;  %vm201_vm1 = vcmask 1042432   ;;  %v2263_v41 = vld [vmem:[%s3600_s2 + $0x14] ss:$8 sps:$4 sm:$0xff]   ;;  %vm202_vm2 = vcmask 1043456  }
  0x1a   :  { %v315_v42 = vld [vmem:[%s3600_s2 + $0xb0] sm:$0xff]  ;;  %v2453_v43 = vmov 65535   ;;  %v2266_v46 = vld [vmem:[%s3600_s2 + $0x4] ss:$8 sps:$4 sm:$0xff]   ;;  %v2268_v49 = vld [vmem:[%s3600_s2] ss:$8 sps:$4 sm:$0xff]  }
  0x1b   :  { %v203_v44 = vsel %vm201_vm1, 4294967295, %v2453_v43  ;;  %v2265_v45 = vld [vmem:[%s3600_s2 + $0x10] ss:$8 sps:$4 sm:$0xff]   ;;  %v2083_v47 = vcombine.high %v315_v42, %v315_v42  ;;  %v2082_v50 = vcombine.low %v315_v42, %v315_v42  ;;  %v2271_v53 = vld [vmem:[%s3600_s2 + $0xa4] ss:$8 sps:$4 sm:$0xff]   ;;  %vm41_vm3 = vcmask 982016  }
  0x1c   :  { %443 = vmatpush1.bf16.msra.mxu1 %v2250_v32  ;;  %214 = vmatpush1.bf16.msra.mxu0 %v2250_v32  ;;  %v2630_v48 = vsel %vm202_vm2, %v203_v44, 0  ;;  %v2273_v55 = vld [vmem:[%s3600_s2 + $0xa0] ss:$8 sps:$4 sm:$0xff]   ;;  %v2274_v56 = vld [vmem:[%s3600_s2 + $0x94] ss:$8 sps:$4 sm:$0xff]   ;;  %vm49_vm4 = vcmask 523264  }
  0x1d   :  { %444 = vmatprep.subr.bf16.mxu1 %v2251_v33  ;;  %215 = vmatprep.subr.bf16.mxu0 %v2251_v33  ;;  %v438_v51 = vand.u32 %v2083_v47, %v2630_v48  ;;  %v435_v52 = vand.u32 %v2082_v50, %v2630_v48  ;;  %v2276_v57 = vld [vmem:[%s3600_s2 + $0x90] ss:$8 sps:$4 sm:$0xff]   ;;  %v2277_v59 = vld [vmem:[%s3600_s2 + $0x84] ss:$8 sps:$4 sm:$0xff]   ;;  %v2279_v60 = vld [vmem:[%s3600_s2 + $0x80] ss:$8 sps:$4 sm:$0xff]  }
  0x1e   :  { %s2454_s2 = smov 64   ;;  %vm197_vm5 = vcmask 449536   ;;  %v2280_v42 = vld [vmem:[%s3601_s3 + $0x70] ss:$8 sps:$4 sm:$0xff]   ;;  %v2283_v50 = vld [vmem:[%s3601_s3 + $0x60] ss:$8 sps:$4 sm:$0xff]  }
  0x1f   :  { %vm260_vm6 = vcmask 1041408   ;;  %vm261_vm7 = vcmask 152580   ;;  %vm1260_vm9 = vcmask 80896   ;;  %vm494_vm10 = vcmask 1041560  }
  0x20   :  { %445 = vmatpush1.bf16.msra.mxu1 %v2253_v34  ;;  %216 = vmatpush1.bf16.msra.mxu0 %v2253_v34  ;;  %vm262_vm8 = vmor %vm261_vm7, %vm260_vm6  ;;  %vm495_vm11 = vcmask 308228   ;;  %vm491_vm12 = vcmask 154624   ;;  %vm782_vm14 = vcmask 1043458   ;;  %vm783_vm15 = vcmask 154630  }
  0x21   :  { %446 = vmatprep.subr.bf16.mxu1 %v2254_v35  ;;  %217 = vmatprep.subr.bf16.mxu0 %v2254_v35  ;;  %vm496_vm13 = vmor %vm495_vm11, %vm494_vm10  ;;  %vm787_vm1 = vcmask 151556   ;;  %vm1087_vm6 = vcmask 1040536   ;;  %vm1088_vm7 = vcmask 307204   ;;  %vm1285_vm11 = vcmask 1044480  }
  0x22   :  { %vm784_vm2 = vmor %vm783_vm15, %vm782_vm14 }
  0x23   :  { %vm1089_vm10 = vmor %vm1088_vm7, %vm1087_vm6 }
  0x24   :  { %447 = vmatpush1.bf16.msra.mxu1 %v2256_v36  ;;  %218 = vmatpush1.bf16.msra.mxu0 %v2256_v36 }
  0x25   :  { %448 = vmatprep.subr.bf16.mxu1 %v2257_v37  ;;  %219 = vmatprep.subr.bf16.mxu0 %v2257_v37 }
  0x28   :  { %449 = vmatpush1.bf16.msra.mxu1 %v2259_v38  ;;  %220 = vmatpush1.bf16.msra.mxu0 %v2259_v38 }
  0x29   :  { %450 = vmatprep.subr.bf16.mxu1 %v2260_v39  ;;  %221 = vmatprep.subr.bf16.mxu0 %v2260_v39 }
  0x2c   :  { %451 = vmatpush1.bf16.msra.mxu1 %v2262_v40  ;;  %222 = vmatpush1.bf16.msra.mxu0 %v2262_v40 }
  0x2d   :  { %452 = vmatprep.subr.bf16.mxu1 %v2263_v41  ;;  %223 = vmatprep.subr.bf16.mxu0 %v2263_v41 }
  0x30   :  { %453 = vmatpush1.bf16.msra.mxu1 %v2265_v45  ;;  %224 = vmatpush1.bf16.msra.mxu0 %v2265_v45  ;;  %v2285_v45 = vld [vmem:[%s3601_s3 + $0x64] ss:$8 sps:$4 sm:$0xff]  }
  0x31   :  { %454 = vmatprep.subr.bf16.mxu1 %v2266_v46  ;;  %225 = vmatprep.subr.bf16.mxu0 %v2266_v46 }
  0x34   :  { %455 = vmatpush1.bf16.msra.mxu1 %v2268_v49  ;;  %226 = vmatpush1.bf16.msra.mxu0 %v2268_v49 }
  0x35   :  { %464 = vmatprep.subr.bf16.mxu1 %v438_v51  ;;  %235 = vmatprep.subr.bf16.mxu0 %v438_v51 }
  0x38   :  { %465 = vmatpush2.bf16.msra.mxu1 %v435_v52  ;;  %236 = vmatpush2.bf16.msra.mxu0 %v435_v52 }
  0x39   :  { %466 = vmatprep.subr.bf16.mxu1 %v2271_v53  ;;  %237 = vmatprep.subr.bf16.mxu0 %v2271_v53 }
  0x3c   :  { %467 = vmatpush2.bf16.msra.mxu1 %v2273_v55  ;;  %238 = vmatpush2.bf16.msra.mxu0 %v2273_v55 }
  0x3d   :  { %468 = vmatprep.subr.bf16.mxu1 %v2274_v56  ;;  %239 = vmatprep.subr.bf16.mxu0 %v2274_v56 }
  0x40   :  { %469 = vmatpush2.bf16.msra.mxu1 %v2276_v57  ;;  %240 = vmatpush2.bf16.msra.mxu0 %v2276_v57 }
  0x41   :  { %470 = vmatprep.subr.bf16.mxu1 %v2277_v59  ;;  %241 = vmatprep.subr.bf16.mxu0 %v2277_v59  ;;  %v2286_v59 = vld [vmem:[%s3601_s3 + $0x50] ss:$8 sps:$4 sm:$0xff]  }
  0x44   :  { %471 = vmatpush2.bf16.msra.mxu1 %v2279_v60  ;;  %242 = vmatpush2.bf16.msra.mxu0 %v2279_v60 }
  0x74   :  { %v268_v8 = vpop.permute.xlu0 %267 }
  0x75   :  { %v802_v9 = vpop.permute.xlu1 %801  ;;  %v269_v10 = vrot.slane %v268_v8, 4 }
  0x77   :  { %v270_v11 = vsel %vm33_vm0, %v268_v8, %v269_v10 }
  0x78   :  { %v2540_v12 = vadd.f32 %v2059_v0, %v270_v11  ;;  %v800_v13 = vpop.permute.xlu0 %799  ;;  %v2282_v0 = vld [vmem:[%s3601_s3 + $0x74] ss:$8 sps:$4 sm:$0xff]  }
  0x79   :  { %v804_v14 = vpop.permute.xlu1 %803  ;;  %v807_v15 = vsel %vm33_vm0, %v800_v13, %v802_v9  ;;  %1023 = vmatprep.subr.bf16.mxu1 %v2282_v0  ;;  %730 = vmatprep.subr.bf16.mxu0 %v2282_v0 }
  0x7a   :  { %v2543_v16 = vadd.f32 %v2112_v2, %v807_v15  ;;  %274 = vrot.lane.b32.xlu0 %v2540_v12, %s2452_s0  ;;  %v808_v23 = vsel %vm33_vm0, %v802_v9, %v804_v14 }
  0x7b   :  { %v2570_v27 = vadd.f32 %v2113_v1, %v808_v23 }
  0x7c   :  { %v806_v18 = vpop.permute.xlu0 %805  ;;  %822 = vrot.lane.b32.xlu1 %v2543_v16, %s2452_s0 }
  0x7d   :  { %v31_v19 = vpop.permute.xlu1 %30  ;;  %v809_v20 = vsel %vm33_vm0, %v804_v14, %v806_v18  ;;  %v2585_v31 = vadd.f32 %v2115_v4, %v806_v18 }
  0x7e   :  { %v32_v21 = vrot.slane %v31_v19, 4  ;;  %v2555_v22 = vadd.f32 %v2114_v3, %v809_v20  ;;  %508 = vrot.lane.b32.xlu0 %v2550_v17, %s2451_s28 }
  0x80   :  { %v34_v24 = vsel %vm33_vm0, %v31_v19, %v32_v21  ;;  %826 = vrot.lane.b32.xlu1 %v2555_v22, %s2452_s0 }
  0x81   :  { %v2566_v26 = vadd.f32 %v34_v24, %v28_v5  ;;  %v507_v54 = vpop.permute.xlu1 %506 }
  0x82   :  { %512 = vrot.lane.b32.xlu0 %v2564_v25, %s2451_s28 }
  0x84   :  { %38 = vrot.lane.b32.xlu1 %v2566_v26, %s2452_s0 }
  0x85   :  { %v511_v58 = vpop.permute.xlu1 %510 }
  0x86   :  { %824 = vrot.lane.b32.xlu0 %v2570_v27, %s2452_s0 }
  0x8a   :  { %828 = vrot.lane.b32.xlu0 %v2585_v31, %s2452_s0 }
  0xec   :  { %v275_v61 = vpop.permute.xlu0 %274 }
  0xed   :  { %v276_v62 = vrot.slane %v275_v61, 4 }
  0xee   :  { %v823_v63 = vpop.permute.xlu1 %822 }
  0xef   :  { %v277_v1 = vsel %vm41_vm3, %v275_v61, %v276_v62  ;;  %v2291_v62 = vld [vmem:[%s3601_s3 + $0x44] ss:$8 sps:$4 sm:$0xff]  }
  0xf0   :  { %v279_v2 = vadd.f32 %v277_v1, %v2540_v12  ;;  %v509_v3 = vpop.permute.xlu0 %508 }
  0xf1   :  { %v514_v4 = vsel %vm33_vm0, %v507_v54, %v509_v3  ;;  %v515_v5 = vsel %vm33_vm0, %v509_v3, %v511_v58  ;;  %v2288_v54 = vld [vmem:[%s3601_s3 + $0x54] ss:$8 sps:$4 sm:$0xff]  }
  0xf2   :  { %v521_v8 = vadd.f32 %v514_v4, %v2526_v6  ;;  %v522_v9 = vadd.f32 %v515_v5, %v2550_v17  ;;  %281 = vrot.lane.b32.xlu0 %v279_v2, %s2454_s2  ;;  %v827_v10 = vpop.permute.xlu1 %826  ;;  %v2294_v4 = vld [vmem:[%s3601_s3 + $0x34] ss:$8 sps:$4 sm:$0xff]  }
  0xf4   :  { %v513_v11 = vpop.permute.xlu0 %512  ;;  %529 = vrot.lane.b32.xlu1 %v521_v8, %s2452_s0 }
  0xf5   :  { %v516_v12 = vsel %vm33_vm0, %v511_v58, %v513_v11  ;;  %v524_v21 = vadd.f32 %v513_v11, %v2564_v25  ;;  %vm786_vm0 = vcmask 1040384  }
  0xf6   :  { %v523_v13 = vadd.f32 %v516_v12, %v2533_v7  ;;  %531 = vrot.lane.b32.xlu0 %v522_v9, %s2452_s0  ;;  %v39_v14 = vpop.permute.xlu1 %38 }
  0xf7   :  { %v40_v20 = vrot.slane %v39_v14, 4 }
  0xf8   :  { %v825_v15 = vpop.permute.xlu0 %824  ;;  %533 = vrot.lane.b32.xlu1 %v523_v13, %s2452_s0 }
  0xf9   :  { %v830_v6 = vsel %vm41_vm3, %v823_v63, %v825_v15  ;;  %v831_v17 = vsel %vm41_vm3, %v825_v15, %v827_v10 }
  0xfa   :  { %v2673_v18 = vadd.f32 %v830_v6, %v2543_v16  ;;  %v2676_v19 = vadd.f32 %v831_v17, %v2570_v27  ;;  %v42_v16 = vsel %vm41_vm3, %v39_v14, %v40_v20  ;;  %v2300_v14 = vld [vmem:[%s3601_s3 + $0x14] ss:$8 sps:$4 sm:$0xff]   ;;  %v2298_v17 = vld [vmem:[%s3601_s3 + $0x10] ss:$8 sps:$4 sm:$0xff]  }
  0xfb   :  { %v44_v25 = vadd.f32 %v42_v16, %v2566_v26  ;;  %v898_v6 = vld [vmem:[%s3601_s3 + $0xb0] sm:$0xff] }
  0xfc   :  { %v829_v7 = vpop.permute.xlu0 %828  ;;  %843 = vrot.lane.b32.xlu0 %v2673_v18, %s2454_s2  ;;  %845 = vrot.lane.b32.xlu1 %v2676_v19, %s2454_s2  ;;  %v2138_v16 = vcombine.low %v898_v6, %v898_v6 }
  0xfd   :  { %v832_v23 = vsel %vm41_vm3, %v827_v10, %v829_v7  ;;  %v840_v27 = vadd.f32 %v829_v7, %v2585_v31  ;;  %v2297_v10 = vld [vmem:[%s3601_s3 + $0x24] ss:$8 sps:$4 sm:$0xff]   ;;  %v2139_v7 = vcombine.high %v898_v6, %v898_v6 }
  0xfe   :  { %v2685_v24 = vadd.f32 %v832_v23, %v2555_v22  ;;  %v2301_v23 = vld [vmem:[%s3601_s3] ss:$8 sps:$4 sm:$0xff]  }
  0xff   :  { %v1112_v6 = vld [vmem:[%s3603_s5 + $0x8] sm:$0xff] }
 0x100   :  { %535 = vrot.lane.b32.xlu0 %v524_v21, %s2452_s0  ;;  %855 = vrot.lane.b32.xlu1 %v2685_v24, %s2454_s2 }
 0x104   :  { %865 = vrot.lane.b32.xlu0 %v840_v27, %s2454_s2  ;;  %46 = vrot.lane.b32.xlu1 %v44_v25, %s2454_s2 }
 0x164   :  { %v282_v28 = vpop.permute.xlu0 %281 }
 0x165   :  { %v283_v29 = vrot.slane %v282_v28, 4 }
 0x166   :  { %v530_v22 = vpop.permute.xlu1 %529 }
 0x167   :  { %v284_v30 = vsel %vm49_vm4, %v282_v28, %v283_v29  ;;  %v1018_v28 = vand.u32 %v2138_v16, %v2630_v48  ;;  %v1114_v16 = vld [vmem:[%s3603_s5 + $0x18] sm:$0xff] }
 0x168   :  { %v286_v32 = vadd.f32 %v284_v30, %v279_v2  ;;  %v532_v33 = vpop.permute.xlu0 %531  ;;  %v2289_v2 = vld [vmem:[%s3601_s3 + $0x40] ss:$8 sps:$4 sm:$0xff]  }
 0x169   :  { %v537_v34 = vsel %vm41_vm3, %v530_v22, %v532_v33  ;;  %v2308_v22 = vld [vmem:[%s3601_s3 + $0xa4] ss:$8 sps:$4 sm:$0xff]  }
 0x16a   :  { %v287_v35 = vmul.f32 0.125, %v286_v32  ;;  %v2697_v36 = vadd.f32 %v537_v34, %v521_v8  ;;  %v534_v26 = vpop.permute.xlu1 %533  ;;  %v2292_v8 = vld [vmem:[%s3601_s3 + $0x30] ss:$8 sps:$4 sm:$0xff]  }
 0x16b   :  { %v538_v31 = vsel %vm41_vm3, %v532_v33, %v534_v26  ;;  %v2309_v33 = vld [vmem:[%s3601_s3 + $0x90] ss:$8 sps:$4 sm:$0xff]  }
 0x16c   :  { %v2700_v37 = vadd.f32 %v538_v31, %v522_v9  ;;  %550 = vrot.lane.b32.xlu0 %v2697_v36, %s2454_s2  ;;  %v289_v38 = vcombine.high %v287_v35, %v287_v35  ;;  %v291_v44 = vpack.c.bf16 %v287_v35, %v287_v35  ;;  %v2312_v35 = vld [vmem:[%s3601_s3 + $0x80] ss:$8 sps:$4 sm:$0xff]  }
 0x16e   :  { %v844_v39 = vpop.permute.xlu0 %843  ;;  %552 = vrot.lane.b32.xlu1 %v2700_v37, %s2454_s2  ;;  %v2706_v40 = vpop.permute.xlu1 %845  ;;  %v292_v41 = vpack.c.bf16 %v289_v38, %v289_v38 }
 0x16f   :  { %v851_v43 = vadd.f32 %v2706_v40, %v2676_v19  ;;  %v847_v15 = vsel %vm49_vm4, %v844_v39, %v2706_v40 }
 0x170   :  { %2084 = vmatprep.mubr.msk.bf16.mxu1 %vm197_vm5, %v292_v41  ;;  %v850_v20 = vadd.f32 %v847_v15, %v2673_v18  ;;  %v1111_v15 = vld [vmem:[%s3603_s5] sm:$0xff] }
 0x171   :  { %473 = vmatmul.mubr.bf16.vlgmr.msra.gmra.mxu1 %v291_v44  ;;  %v853_v46 = vadd.f32 %v851_v43, %v2685_v24 }
 0x172   :  { %1024 = vmatpush1.bf16.msra.mxu1 %v2280_v42  ;;  %v536_v47 = vpop.permute.xlu0 %535  ;;  %v2718_v49 = vpop.permute.xlu1 %855 }
 0x173   :  { %v539_v51 = vsel %vm41_vm3, %v534_v26, %v536_v47  ;;  %v2724_v52 = vadd.f32 %v536_v47, %v524_v21  ;;  %v861_v53 = vadd.f32 %v2718_v49, %v853_v46  ;;  %1025 = vmatprep.subr.bf16.mxu1 %v2285_v45  ;;  %v2303_v21 = vld [vmem:[%s3601_s3 + $0x4] ss:$8 sps:$4 sm:$0xff]   ;;  %v857_v18 = vsel %vm49_vm4, %v2706_v40, %v2718_v49  ;;  %vm788_vm3 = vmor %vm787_vm1, %vm786_vm0 }
 0x174   :  { %v2730_v55 = vadd.f32 %v539_v51, %v523_v13  ;;  %v2295_v13 = vld [vmem:[%s3601_s3 + $0x20] ss:$8 sps:$4 sm:$0xff]  }
 0x175   :  { %572 = vrot.lane.b32.xlu1 %v2724_v52, %s2454_s2  ;;  %v863_v56 = vadd.f32 %v861_v53, %v840_v27  ;;  %v1021_v27 = vand.u32 %v2139_v7, %v2630_v48  ;;  %v2311_v48 = vld [vmem:[%s3601_s3 + $0x94] ss:$8 sps:$4 sm:$0xff]   ;;  %v1115_v7 = vld [vmem:[%s3603_s5 + $0x20] sm:$0xff] }
 0x176   :  { %1026 = vmatpush1.bf16.msra.mxu1 %v2283_v50  ;;  %v2734_v57 = vpop.permute.xlu0 %865  ;;  %562 = vrot.lane.b32.xlu0 %v2730_v55, %s2454_s2  ;;  %v47_v58 = vpop.permute.xlu1 %46 }
 0x177   :  { %v871_v60 = vadd.f32 %v2734_v57, %v863_v56  ;;  %v48_v61 = vrot.slane %v47_v58, 4  ;;  %1027 = vmatprep.subr.bf16.mxu1 %v2288_v54  ;;  %v867_v32 = vsel %vm49_vm4, %v2718_v49, %v2734_v57 }
 0x179   :  { %v873_v63 = vmul.f32 0.041666668, %v871_v60  ;;  %v50_v0 = vsel %vm49_vm4, %v47_v58, %v48_v61 }
 0x17a   :  { %v52_v1 = vadd.f32 %v50_v0, %v44_v25  ;;  %1028 = vmatpush1.bf16.msra.mxu1 %v2286_v59  ;;  %v852_v25 = vadd.f32 %v850_v20, %v2676_v19  ;;  %v2306_v19 = vld [vmem:[%s3601_s3 + $0xa0] ss:$8 sps:$4 sm:$0xff]  }
 0x17b   :  { %v875_v3 = vpack.c.bf16 %v873_v63, %v873_v63  ;;  %1029 = vmatprep.subr.bf16.mxu1 %v2291_v62 }
 0x17c   :  { %v53_v5 = vmul.f32 0.125, %v52_v1  ;;  %v860_v29 = vadd.f32 %v857_v18, %v852_v25  ;;  %v1117_v25 = vld [vmem:[%s3603_s5 + $0x30] sm:$0xff]  ;;  %v1119_v18 = vld [vmem:[%s3603_s5 + $0x40] sm:$0xff] }
 0x17d   :  { %2140 = vmatprep.mubr.msk.bf16.mxu1 %vm197_vm5, %v875_v3 }
 0x17e   :  { %1030 = vmatpush1.bf16.msra.mxu1 %v2289_v2  ;;  %v55_v9 = vcombine.high %v53_v5, %v53_v5  ;;  %v57_v12 = vpack.c.bf16 %v53_v5, %v53_v5  ;;  %v862_v30 = vadd.f32 %v860_v29, %v2685_v24  ;;  %v2314_v24 = vld [vmem:[%s3601_s3 + $0x84] ss:$8 sps:$4 sm:$0xff]   ;;  %s2455_s3 = smov 19   ;;  %v1118_v29 = vld [vmem:[%s3603_s5 + $0x38] sm:$0xff] }
 0x17f   :  { %1031 = vmatprep.subr.bf16.mxu1 %v2294_v4 }
 0x180   :  { %v58_v11 = vpack.c.bf16 %v55_v9, %v55_v9  ;;  %v870_v34 = vadd.f32 %v867_v32, %v862_v30 }
 0x182   :  { %1032 = vmatpush1.bf16.msra.mxu1 %v2292_v8  ;;  %2057 = vmatprep.mubr.msk.bf16.mxu0 %vm197_vm5, %v58_v11  ;;  %v872_v26 = vmul.f32 0.041666668, %v870_v34  ;;  %v1123_v34 = vld [vmem:[%s3603_s5 + $0x60] sm:$0xff] }
 0x183   :  { %244 = vmatmul.mubr.bf16.vlgmr.msra.gmra.mxu0 %v57_v12  ;;  %1033 = vmatprep.subr.bf16.mxu1 %v2297_v10 }
 0x184   :  { %731 = vmatpush1.bf16.msra.mxu0 %v2280_v42  ;;  %v874_v31 = vpack.c.bf16 %v872_v26, %v872_v26  ;;  %v1122_v26 = vld [vmem:[%s3603_s5 + $0x58] sm:$0xff] }
 0x185   :  { %732 = vmatprep.subr.bf16.mxu0 %v2285_v45 }
 0x186   :  { %1034 = vmatpush1.bf16.msra.mxu1 %v2295_v13 }
 0x187   :  { %1035 = vmatprep.subr.bf16.mxu1 %v2300_v14 }
 0x188   :  { %733 = vmatpush1.bf16.msra.mxu0 %v2283_v50 }
 0x189   :  { %734 = vmatprep.subr.bf16.mxu0 %v2288_v54 }
 0x18a   :  { %1036 = vmatpush1.bf16.msra.mxu1 %v2298_v17 }
 0x18b   :  { %1037 = vmatprep.subr.bf16.mxu1 %v2303_v21 }
 0x18c   :  { %735 = vmatpush1.bf16.msra.mxu0 %v2286_v59 }
 0x18d   :  { %736 = vmatprep.subr.bf16.mxu0 %v2291_v62 }
 0x18e   :  { %1038 = vmatpush1.bf16.msra.mxu1 %v2301_v23 }
 0x18f   :  { %1047 = vmatprep.subr.bf16.mxu1 %v1021_v27 }
 0x190   :  { %737 = vmatpush1.bf16.msra.mxu0 %v2289_v2 }
 0x191   :  { %738 = vmatprep.subr.bf16.mxu0 %v2294_v4 }
 0x192   :  { %1048 = vmatpush2.bf16.msra.mxu1 %v1018_v28 }
 0x193   :  { %1049 = vmatprep.subr.bf16.mxu1 %v2308_v22 }
 0x194   :  { %739 = vmatpush1.bf16.msra.mxu0 %v2292_v8 }
 0x195   :  { %740 = vmatprep.subr.bf16.mxu0 %v2297_v10 }
 0x196   :  { %1050 = vmatpush2.bf16.msra.mxu1 %v2306_v19 }
 0x197   :  { %1051 = vmatprep.subr.bf16.mxu1 %v2311_v48 }
 0x198   :  { %741 = vmatpush1.bf16.msra.mxu0 %v2295_v13  ;;  %v2822_v13 = vld [vmem:[%s3602_s4] sm:$0xff]  }
 0x199   :  { %742 = vmatprep.subr.bf16.mxu0 %v2300_v14  ;;  %v2456_v14 = vmov 0  }
 0x19a   :  { %1052 = vmatpush2.bf16.msra.mxu1 %v2309_v33  ;;  %2243 = vset.pattern.permute.xlu1 %v2456_v14 }
 0x19b   :  { %1053 = vmatprep.subr.bf16.mxu1 %v2314_v24  ;;  %2244 = vset.pattern.permute.xlu0 %v2456_v14 }
 0x19c   :  { %743 = vmatpush1.bf16.msra.mxu0 %v2298_v17 }
 0x19d   :  { %744 = vmatprep.subr.bf16.mxu0 %v2303_v21  ;;  %v1113_v21 = vld [vmem:[%s3603_s5 + $0x10] sm:$0xff] }
 0x19e   :  { %1054 = vmatpush2.bf16.msra.mxu1 %v2312_v35 }
 0x1a0   :  { %745 = vmatpush1.bf16.msra.mxu0 %v2301_v23 }
 0x1a1   :  { %1056 = vmatmul.mubr.bf16.vlgmr.msra.gmra.mxu1 %v874_v31  ;;  %754 = vmatprep.subr.bf16.mxu0 %v1021_v27  ;;  %v1116_v27 = vld [vmem:[%s3603_s5 + $0x28] sm:$0xff]  ;;  %v1125_v31 = vld [vmem:[%s3603_s5 + $0x70] sm:$0xff] }
 0x1a2   :  { %2196 = vmatprep.mubr.msk.bf16.mxu1 %vm1260_vm9, %v2822_v13 }
 0x1a4   :  { %755 = vmatpush2.bf16.msra.mxu0 %v1018_v28 }
 0x1a5   :  { %756 = vmatprep.subr.bf16.mxu0 %v2308_v22  ;;  %v1121_v22 = vld [vmem:[%s3603_s5 + $0x50] sm:$0xff] }
 0x1a8   :  { %757 = vmatpush2.bf16.msra.mxu0 %v2306_v19 }
 0x1a9   :  { %758 = vmatprep.subr.bf16.mxu0 %v2311_v48 }
 0x1ac   :  { %759 = vmatpush2.bf16.msra.mxu0 %v2309_v33  ;;  %v1120_v33 = vld [vmem:[%s3603_s5 + $0x48] sm:$0xff] }
 0x1ad   :  { %760 = vmatprep.subr.bf16.mxu0 %v2314_v24 }
 0x1b0   :  { %761 = vmatpush2.bf16.msra.mxu0 %v2312_v35 }
 0x1de   :  { %v551_v38 = vpop.permute.xlu0 %550 }
 0x1e0   :  { %v553_v39 = vpop.permute.xlu1 %552 }
 0x1e1   :  { %v554_v40 = vsel %vm49_vm4, %v551_v38, %v553_v39  ;;  %v558_v41 = vadd.f32 %v553_v39, %v2700_v37  ;;  %v1124_v38 = vld [vmem:[%s3603_s5 + $0x68] sm:$0xff] }
 0x1e2   :  { %v557_v42 = vadd.f32 %v554_v40, %v2697_v36 }
 0x1e3   :  { %v560_v43 = vadd.f32 %v558_v41, %v2730_v55 }
 0x1e4   :  { %v559_v45 = vadd.f32 %v557_v42, %v2700_v37 }
 0x1e7   :  { %v573_v49 = vpop.permute.xlu1 %572 }
 0x1e8   :  { %v563_v44 = vpop.permute.xlu0 %562 }
 0x1e9   :  { %v564_v46 = vsel %vm49_vm4, %v553_v39, %v563_v44  ;;  %v568_v47 = vadd.f32 %v563_v44, %v560_v43  ;;  %v574_v54 = vsel %vm49_vm4, %v563_v44, %v573_v49  ;;  %v1126_v39 = vld [vmem:[%s3603_s5 + $0x78] sm:$0xff]  ;;  %vm1083_vm4 = vcmask 1043610  }
 0x1ea   :  { %v567_v50 = vadd.f32 %v564_v46, %v559_v45 }
 0x1eb   :  { %v570_v51 = vadd.f32 %v568_v47, %v2724_v52 }
 0x1ec   :  { %v569_v53 = vadd.f32 %v567_v50, %v2730_v55 }
 0x1ed   :  { %v578_v56 = vadd.f32 %v573_v49, %v570_v51  ;;  %v2320_v51 = vld [vmem:[%s3602_s4 + $0x8] sm:$0xff]  }
 0x1ee   :  { %v577_v57 = vadd.f32 %v574_v54, %v569_v53  ;;  %v2321_v54 = vld [vmem:[%s3602_s4 + $0x10] sm:$0xff]  }
 0x1ef   :  { %v580_v58 = vmul.f32 0.041666668, %v578_v56  ;;  %v2322_v56 = vld [vmem:[%s3602_s4 + $0x18] sm:$0xff]  }
 0x1f0   :  { %v579_v36 = vmul.f32 0.041666668, %v577_v57  ;;  %v2323_v57 = vld [vmem:[%s3602_s4 + $0x20] sm:$0xff]  }
 0x1f1   :  { %v582_v59 = vpack.c.bf16 %v580_v58, %v580_v58  ;;  %v2324_v58 = vld [vmem:[%s3602_s4 + $0x28] sm:$0xff]  }
 0x1f2   :  { %v581_v60 = vpack.c.bf16 %v579_v36, %v579_v36  ;;  %v2325_v36 = vld [vmem:[%s3602_s4 + $0x30] sm:$0xff]  }
 0x1f3   :  { %2110 = vmatprep.mubr.msk.bf16.mxu0 %vm197_vm5, %v582_v59  ;;  %vm1084_vm5 = vcmask 310278   ;;  %v2326_v59 = vld [vmem:[%s3602_s4 + $0x38] sm:$0xff]  }
 0x1f4   :  { %763 = vmatmul.mubr.bf16.vlgmr.msra.gmra.mxu0 %v581_v60 }
 0x1f5   :  { %1327 = vmatprep.mubr.bf16.mxu0 %v2456_v14 }
 0x231   :  { %v474_v37 = vpop.f32.mrf.mxu1 }
 0x233   :  { %v476_v61 = vpop.f32.mrf.mxu1 }
 0x234   :  { %v2173_v62 = vpack.c.bf16 %v476_v61, %v474_v37 }
 0x235   :  { %v478_v63 = vpop.f32.mrf.mxu1 }
 0x236   :  { %488 = vrot.lane.b32.xlu0 %v2173_v62, %s2455_s3 }
 0x237   :  { %v479_v52 = vpop.f32.mrf.mxu1 }
 0x243   :  { %v245_v55 = vpop.f32.mrf.mxu0 }
 0x245   :  { %v247_v0 = vpop.f32.mrf.mxu0 }
 0x246   :  { %v2172_v1 = vpack.c.bf16 %v247_v0, %v245_v55 }
 0x247   :  { %v249_v2 = vpop.f32.mrf.mxu0 }
 0x248   :  { %263 = vst.msk [vmem:[#allocation2] sm:$0x33] %vm262_vm8, %v2172_v1  ;;  %vm1085_vm8 = vmor %vm1084_vm5, %vm1083_vm4 }
 0x249   :  { %v250_v3 = vpop.f32.mrf.mxu0 }
 0x261   :  { %v1057_v4 = vpop.f32.mrf.mxu1 }
 0x263   :  { %v1059_v5 = vpop.f32.mrf.mxu1 }
 0x264   :  { %v2175_v8 = vpack.c.bf16 %v1059_v5, %v1057_v4 }
 0x265   :  { %v1061_v9 = vpop.f32.mrf.mxu1 }
 0x266   :  { %v1071_v10 = vrot.slane %v2175_v8, 6 }
 0x267   :  { %v1062_v11 = vpop.f32.mrf.mxu1 }
 0x268   :  { %v1072_v12 = vrot.slane %v1071_v10, 4  ;;  %1073 = vrot.lane.b32.xlu1 %v1071_v10, %s2455_s3 }
 0x26a   :  { %1075 = vrot.lane.b32.xlu0 %v1072_v12, %s2455_s3 }
 0x26c   :  { %1129 = vperm.xlu1 %2243, %v1111_v15  }
 0x26e   :  { %1134 = vperm.xlu0 %2244, %v1112_v6  }
 0x270   :  { %1139 = vperm.xlu1 %2243, %v1113_v21  }
 0x272   :  { %1149 = vperm.xlu0 %2244, %v1115_v7  }
 0x274   :  { %1144 = vperm.xlu1 %2243, %v1114_v16  }
 0x276   :  { %1159 = vperm.xlu0 %2244, %v1117_v25  }
 0x278   :  { %1154 = vperm.xlu1 %2243, %v1116_v27  }
 0x27a   :  { %1169 = vperm.xlu0 %2244, %v1119_v18  }
 0x27c   :  { %1164 = vperm.xlu1 %2243, %v1118_v29  }
 0x27e   :  { %1179 = vperm.xlu0 %2244, %v1121_v22  }
 0x280   :  { %1174 = vperm.xlu1 %2243, %v1120_v33  }
 0x282   :  { %1189 = vperm.xlu0 %2244, %v1123_v34  }
 0x284   :  { %1184 = vperm.xlu1 %2243, %v1122_v26  }
 0x286   :  { %1199 = vperm.xlu0 %2244, %v1125_v31  }
 0x288   :  { %1194 = vperm.xlu1 %2243, %v1124_v38  }
 0x28c   :  { %1204 = vperm.xlu1 %2243, %v1126_v39  }
 0x2a8   :  { %v489_v17 = vpop.permute.xlu0 %488 }
 0x2a9   :  { %v490_v20 = vrot.slane %v489_v17, 4 }
 0x2ab   :  { %v492_v23 = vsel %vm491_vm12, %v490_v20, %v489_v17 }
 0x2ac   :  { %497 = vst.msk [vmem:[#allocation2 + $0x4] sm:$0x33] %vm496_vm13, %v492_v23 }
 0x2b4   :  { %v764_v28 = vpop.f32.mrf.mxu0 }
 0x2b6   :  { %v766_v19 = vpop.f32.mrf.mxu0 }
 0x2b7   :  { %v2174_v30 = vpack.c.bf16 %v766_v19, %v764_v28 }
 0x2b8   :  { %v768_v48 = vpop.f32.mrf.mxu0 }
 0x2b9   :  { %v778_v32 = vrot.slane %v2174_v30, 6 }
 0x2ba   :  { %v769_v24 = vpop.f32.mrf.mxu0 }
 0x2bb   :  { %v779_v35 = vrot.slane %v778_v32, 4  ;;  %785 = vst.msk [vmem:[#allocation2] sm:$0xcc] %vm784_vm2, %v778_v32 }
 0x2bd   :  { %789 = vst.msk [vmem:[#allocation2 + $0xc] sm:$0x11] %vm788_vm3, %v779_v35 }
 0x2c4   :  { %v2318_v49 = vld [vmem:[#allocation2] ss:$12 sps:$4 sm:$0x1f]  }
 0x2c5   :  { %v1287_v53 = vsel %vm1285_vm11, %v2318_v49, 0 }
 0x2da   :  { %v1074_v40 = vpop.permute.xlu1 %1073 }
 0x2db   :  { %v1077_v41 = vrot.slane %v1074_v40, 4 }
 0x2dc   :  { %v1076_v42 = vpop.permute.xlu0 %1075 }
 0x2dd   :  { %v1079_v43 = vsel %vm491_vm12, %v1077_v41, %v1074_v40  ;;  %v1078_v44 = vrot.slane %v1076_v42, 4 }
 0x2de   :  { %1086 = vst.msk [vmem:[#allocation2 + $0x4] sm:$0xcc] %vm1085_vm8, %v1079_v43 }
 0x2df   :  { %v1080_v45 = vsel %vm491_vm12, %v1078_v44, %v1076_v42  ;;  %vm2458_vm12 = vmmov 0  }
 0x2e0   :  { %1090 = vst.msk [vmem:[#allocation2 + $0x10] sm:$0x11] %vm1089_vm10, %v1080_v45 }
 0x2e7   :  { %v2315_v46 = vld [vmem:[#allocation2 + $0x4] ss:$12 sps:$4 sm:$0x1f]   ;;  %v2317_v47 = vld [vmem:[#allocation2 + $0x8] ss:$12 sps:$4 sm:$0x1f]   ;;  %v2924_v60 = vpop.permute.xlu1 %1129 }
 0x2e8   :  { %2153 = vmatprep.subr.msk.bf16.mxu0 %vm1285_vm11, %v2315_v46  ;;  %2232 = vmatprep.subr.msk.bf16.mxu1 %vm1285_vm11, %v2317_v47  ;;  %v1293_v50 = vsel %vm1285_vm11, %v2317_v47, 0 }
 0x2e9   :  { %2195 = vmatpush3.bf16.msra.mxu1 %v1293_v50  ;;  %1310 = vmatpush1.bf16.msra.mxu0 %v1287_v53  ;;  %v2928_v61 = vpop.permute.xlu0 %1134 }
 0x2eb   :  { %v2926_v37 = vpop.permute.xlu1 %1139 }
 0x2ec   :  { %2197 = vmatmul.mubr.msk.bf16.vlgmr.msra.gmra.mxu1 %vm1260_vm9, %v2320_v51  ;;  %2154 = vmatmul.mubr.msk.bf16.vlgmr.msra.gmra.mxu0 %vm1260_vm9, %v2822_v13 }
 0x2ed   :  { %2200 = vmatprep.mubr.msk.bf16.mxu1 %vm1260_vm9, %v2321_v54  ;;  %1337 = vmatprep.mubr.bf16.mxu0 %v2456_v14  ;;  %v2932_v63 = vpop.permute.xlu0 %1149 }
 0x2ef   :  { %v2930_v62 = vpop.permute.xlu1 %1144 }
 0x2f1   :  { %v2936_v0 = vpop.permute.xlu0 %1159 }
 0x2f3   :  { %v2934_v52 = vpop.permute.xlu1 %1154 }
 0x2f4   :  { %2201 = vmatmul.mubr.msk.bf16.gmra.mxu1 %vm1260_vm9, %v2322_v56  ;;  %2155 = vmatmul.mubr.msk.bf16.gmra.mxu0 %vm1260_vm9, %v2320_v51 }
 0x2f5   :  { %2204 = vmatprep.mubr.msk.bf16.mxu1 %vm1260_vm9, %v2323_v57  ;;  %1347 = vmatprep.mubr.bf16.mxu0 %v2456_v14  ;;  %v2952_v12 = vpop.permute.xlu0 %1169 }
 0x2f7   :  { %v2948_v9 = vpop.permute.xlu1 %1164 }
 0x2f9   :  { %v2982_v19 = vpop.permute.xlu0 %1179 }
 0x2fb   :  { %v2968_v16 = vpop.permute.xlu1 %1174 }
 0x2fc   :  { %2205 = vmatmul.mubr.msk.bf16.gmra.mxu1 %vm1260_vm9, %v2324_v58  ;;  %2156 = vmatmul.mubr.msk.bf16.gmra.mxu0 %vm1260_vm9, %v2321_v54 }
 0x2fd   :  { %2208 = vmatprep.mubr.msk.bf16.mxu1 %vm1260_vm9, %v2325_v36  ;;  %1357 = vmatprep.mubr.bf16.mxu0 %v2456_v14  ;;  %v3004_v45 = vpop.permute.xlu0 %1189 }
 0x2ff   :  { %v2998_v39 = vpop.permute.xlu1 %1184 }
 0x304   :  { %2209 = vmatmul.mubr.msk.bf16.gmra.mxu1 %vm1260_vm9, %v2326_v59  ;;  %2157 = vmatmul.mubr.msk.bf16.gmra.mxu0 %vm1260_vm9, %v2322_v56 }
 0x305   :  { %1367 = vmatprep.mubr.bf16.mxu0 %v2456_v14 }
 0x30c   :  { %2158 = vmatmul.mubr.msk.bf16.gmra.mxu0 %vm1260_vm9, %v2323_v57 }
 0x30d   :  { %1377 = vmatprep.mubr.bf16.mxu0 %v2456_v14 }
 0x314   :  { %2159 = vmatmul.mubr.msk.bf16.gmra.mxu0 %vm1260_vm9, %v2324_v58 }
 0x315   :  { %1387 = vmatprep.mubr.bf16.mxu0 %v2456_v14 }
 0x31c   :  { %2160 = vmatmul.mubr.msk.bf16.gmra.mxu0 %vm1260_vm9, %v2325_v36  ;;  %v3018_v36 = vpop.permute.xlu1 %1194 }
 0x31d   :  { %1397 = vmatprep.mubr.bf16.mxu0 %v2456_v14 }
 0x324   :  { %2161 = vmatmul.mubr.msk.bf16.gmra.mxu0 %vm1260_vm9, %v2326_v59  ;;  %vm1547_vm9 = vcmask 310272  }
 0x3ac   :  { %v2198_v55 = vpop.f32.mrf.mxu1  ;;  %v2938_v1 = vpop.f32.mrf.mxu0 }
 0x3ad   :  { %v2946_v5 = vadd.f32 %v2198_v55, %v2926_v37 }
 0x3ae   :  { %v1442_v2 = vpop.f32.mrf.mxu1  ;;  %v2940_v3 = vpop.f32.mrf.mxu0 }
 0x3af   :  { %v2943_v4 = vadd.f32 %v1442_v2, %v2924_v60  ;;  %v1550_v14 = vsel %vm1547_vm9, %v2946_v5, -inf }
 0x3b0   :  { %v2199_v8 = vpop.f32.mrf.mxu1  ;;  %v2950_v10 = vpop.f32.mrf.mxu0 }
 0x3b1   :  { %v1548_v13 = vsel %vm1547_vm9, %v2943_v4, -inf  ;;  %v2964_v17 = vadd.f32 %v2199_v8, %v2930_v62 }
 0x3b2   :  { %v1445_v11 = vpop.f32.mrf.mxu1  ;;  %v2958_v15 = vpop.f32.mrf.mxu0  ;;  %v1551_v7 = vmax.f32 %v1548_v13, %v1550_v14 }
 0x3b3   :  { %v2961_v6 = vadd.f32 %v1445_v11, %v2928_v61  ;;  %v1552_v27 = vsel %vm1547_vm9, %v2964_v17, -inf  ;;  %v3028_v13 = vpop.permute.xlu0 %1199 }
 0x3b4   :  { %v2202_v20 = vpop.f32.mrf.mxu1  ;;  %v2966_v21 = vpop.f32.mrf.mxu0 }
 0x3b5   :  { %v1549_v25 = vsel %vm1547_vm9, %v2961_v6, -inf  ;;  %v2980_v29 = vadd.f32 %v2202_v20, %v2936_v0 }
 0x3b6   :  { %v1458_v23 = vpop.f32.mrf.mxu1  ;;  %v2974_v18 = vpop.f32.mrf.mxu0  ;;  %v1553_v34 = vmax.f32 %v1549_v25, %v1552_v27 }
 0x3b7   :  { %v2977_v28 = vadd.f32 %v1458_v23, %v2932_v63  ;;  %v1558_v26 = vsel %vm1547_vm9, %v2980_v29, -inf }
 0x3b8   :  { %v2203_v22 = vpop.f32.mrf.mxu1  ;;  %v2986_v48 = vpop.f32.mrf.mxu0 }
 0x3b9   :  { %v1554_v30 = vsel %vm1547_vm9, %v2977_v28, -inf  ;;  %v2996_v31 = vadd.f32 %v2203_v22, %v2948_v9 }
 0x3ba   :  { %v1555_v32 = vmax.f32 %v1551_v7, %v1554_v30  ;;  %v1461_v33 = vpop.f32.mrf.mxu1  ;;  %v2988_v24 = vpop.f32.mrf.mxu0 }
 0x3bb   :  { %v2991_v35 = vadd.f32 %v1461_v33, %v2934_v52  ;;  %v1560_v46 = vsel %vm1547_vm9, %v2996_v31, -inf }
 0x3bc   :  { %v2206_v38 = vpop.f32.mrf.mxu1  ;;  %v3002_v41 = vpop.f32.mrf.mxu0  ;;  %v1559_v43 = vmax.f32 %v1555_v32, %v1558_v26 }
 0x3bd   :  { %v1556_v40 = vsel %vm1547_vm9, %v2991_v35, -inf  ;;  %v3014_v50 = vadd.f32 %v2206_v38, %v2982_v19 }
 0x3be   :  { %v1557_v42 = vmax.f32 %v1553_v34, %v1556_v40  ;;  %v1474_v44 = vpop.f32.mrf.mxu1  ;;  %v3008_v47 = vpop.f32.mrf.mxu0 }
 0x3bf   :  { %v3011_v49 = vadd.f32 %v1474_v44, %v2952_v12  ;;  %v1566_v2 = vsel %vm1547_vm9, %v3014_v50, -inf  ;;  %v3040_v34 = vpop.permute.xlu1 %1204 }
 0x3c0   :  { %v2207_v51 = vpop.f32.mrf.mxu1  ;;  %v1353_v54 = vpop.f32.mrf.mxu0  ;;  %v1561_v58 = vmax.f32 %v1557_v42, %v1560_v46 }
 0x3c1   :  { %v1562_v53 = vsel %vm1547_vm9, %v3011_v49, -inf  ;;  %v3026_v8 = vadd.f32 %v2207_v51, %v2998_v39 }
 0x3c2   :  { %v1563_v56 = vmax.f32 %v1559_v43, %v1562_v53  ;;  %v1477_v57 = vpop.f32.mrf.mxu1  ;;  %v1355_v59 = vpop.f32.mrf.mxu0 }
 0x3c3   :  { %v3021_v55 = vadd.f32 %v1477_v57, %v2968_v16  ;;  %v1568_v27 = vsel %vm1547_vm9, %v3026_v8, -inf }
 0x3c4   :  { %v2210_v11 = vpop.f32.mrf.mxu1  ;;  %v1359_v20 = vpop.f32.mrf.mxu0  ;;  %v1567_v23 = vmax.f32 %v1563_v56, %v1566_v2 }
 0x3c5   :  { %v1564_v14 = vsel %vm1547_vm9, %v3021_v55, -inf  ;;  %v3038_v32 = vadd.f32 %v2210_v11, %v3028_v13 }
 0x3c6   :  { %v1565_v7 = vmax.f32 %v1561_v58, %v1564_v14  ;;  %v1490_v25 = vpop.f32.mrf.mxu1  ;;  %v1361_v22 = vpop.f32.mrf.mxu0 }
 0x3c7   :  { %v3035_v30 = vadd.f32 %v1490_v25, %v3004_v45  ;;  %3608 = vst [vmem:[#allocation6_spill] sm:$0xff] %v3038_v32  ;;  %v1574_v51 = vsel %vm1547_vm9, %v3038_v32, -inf }
 0x3c8   :  { %v2211_v33 = vpop.f32.mrf.mxu1  ;;  %v1363_v38 = vpop.f32.mrf.mxu0  ;;  %v1569_v43 = vmax.f32 %v1565_v7, %v1568_v27  ;;  %v2457_v7 = vmov 0.0  }
 0x3c9   :  { %v1570_v26 = vsel %vm1547_vm9, %v3035_v30, -inf  ;;  %v3050_v53 = vadd.f32 %v2211_v33, %v3040_v34  ;;  %2212 = vmatprep.subr.bf16.mxu1 %v2457_v7  ;;  %2228 = vmatprep.mubr.msk.bf16.mxu1 %vm2458_vm12, %v2457_v7 }
 0x3ca   :  { %v1571_v40 = vmax.f32 %v1567_v23, %v1570_v26  ;;  %v1493_v42 = vpop.f32.mrf.mxu1  ;;  %v1365_v44 = vpop.f32.mrf.mxu0 }
 0x3cb   :  { %v3045_v46 = vadd.f32 %v1493_v42, %v3018_v36  ;;  %v1576_v11 = vsel %vm1547_vm9, %v3050_v53, -inf }
 0x3cc   :  { %v1369_v57 = vpop.f32.mrf.mxu0  ;;  %v1575_v2 = vmax.f32 %v1571_v40, %v1574_v51  ;;  %v3063_v40 = vadd.f32 %v2974_v18, %v2926_v37  ;;  %v3091_v18 = vadd.f32 %v2958_v15, %v2928_v61 }
 0x3cd   :  { %3609 = vst [vmem:[#allocation7_spill] sm:$0xff] %v3045_v46  ;;  %v1572_v56 = vsel %vm1547_vm9, %v3045_v46, -inf  ;;  %v3059_v46 = vadd.f32 %v2966_v21, %v2926_v37  ;;  %v3079_v21 = vadd.f32 %v3002_v41, %v2932_v63  ;;  %v3083_v37 = vadd.f32 %v2940_v3, %v2924_v60 }
 0x3ce   :  { %v1573_v58 = vmax.f32 %v1569_v43, %v1572_v56  ;;  %v1371_v14 = vpop.f32.mrf.mxu0  ;;  %v3067_v56 = vadd.f32 %v2938_v1, %v2924_v60  ;;  %v3087_v1 = vadd.f32 %v2950_v10, %v2928_v61  ;;  %v3100_v41 = vadd.f32 %v1353_v54, %v2934_v52 }
 0x3cf   :  { %v3103_v60 = vadd.f32 %v1355_v59, %v2934_v52  ;;  %v1526_v10 = vmax.f32 %v3083_v37, %v3063_v40  ;;  %v3108_v61 = vadd.f32 %v1359_v20, %v2936_v0  ;;  %v3116_v54 = vadd.f32 %v1361_v22, %v2936_v0 }
 0x3d0   :  { %v1577_v23 = vmax.f32 %v1573_v58, %v1576_v11  ;;  %v1373_v25 = vpop.f32.mrf.mxu0  ;;  %v3071_v58 = vadd.f32 %v2986_v48, %v2930_v62  ;;  %v3119_v59 = vadd.f32 %v1363_v38, %v2948_v9  ;;  %v3125_v20 = vadd.f32 %v1369_v57, %v2952_v12 }
 0x3d1   :  { %v3133_v0 = vadd.f32 %v1371_v14, %v2952_v12  ;;  %v3146_v12 = vadd.f32 %v1373_v25, %v2968_v16 }
 0x3d2   :  { %v1578_v27 = vmax.f32 %v1575_v2, %v1577_v23  ;;  %v1375_v26 = vpop.f32.mrf.mxu0  ;;  %v3075_v2 = vadd.f32 %v2988_v24, %v2930_v62  ;;  %v1505_v62 = vmax.f32 %v3067_v56, %v3059_v46  ;;  %v3097_v24 = vadd.f32 %v3008_v47, %v2932_v63 }
 0x3d3   :  { %v3122_v23 = vadd.f32 %v1365_v44, %v2948_v9  ;;  %v3149_v14 = vadd.f32 %v1375_v26, %v2968_v16 }
 0x3d4   :  { %v1579_v42 = vrot.slane %v1578_v27, 4  ;;  %v1379_v33 = vpop.f32.mrf.mxu0  ;;  %v1527_v63 = vmax.f32 %v3091_v18, %v3075_v2  ;;  %v1507_v47 = vmax.f32 %v1505_v62, %v3079_v21 }
 0x3d6   :  { %v1580_v32 = vmax.f32 %v1578_v27, %v1579_v42  ;;  %v1381_v43 = vpop.f32.mrf.mxu0  ;;  %v1528_v42 = vmax.f32 %v1526_v10, %v3097_v24  ;;  %v1529_v62 = vmax.f32 %v1527_v63, %v3103_v60  ;;  %v1509_v38 = vmax.f32 %v1507_v47, %v3108_v61 }
 0x3d7   :  { %v3161_v25 = vadd.f32 %v1381_v43, %v2982_v19 }
 0x3d8   :  { %v1581_v51 = vrot.slane %v1580_v32, 2  ;;  %v1383_v11 = vpop.f32.mrf.mxu0 }
 0x3d9   :  { %v3164_v16 = vadd.f32 %v1383_v11, %v2998_v39 }
 0x3da   :  { %v1582_v48 = vmax.f32 %v1580_v32, %v1581_v51  ;;  %v1385_v3 = vpop.f32.mrf.mxu0  ;;  %v1506_v32 = vmax.f32 %v3087_v1, %v3071_v58 }
 0x3dc   :  { %v1583_v15 = vrot.slane %v1582_v48, 1  ;;  %v1389_v52 = vpop.f32.mrf.mxu0  ;;  %v1508_v51 = vmax.f32 %v1506_v32, %v3100_v41  ;;  %v1531_v32 = vmax.f32 %v1529_v62, %v3122_v23 }
 0x3de   :  { %v3127_v27 = vmax.f32 %v1582_v48, %v1583_v15  ;;  %v1391_v22 = vpop.f32.mrf.mxu0  ;;  %v1530_v48 = vmax.f32 %v1528_v42, %v3116_v54 }
 0x3e0   :  { %v1587_v9 = vsub.f32 %v2943_v4, %v3127_v27  ;;  %v1590_v44 = vsub.f32 %v2961_v6, %v3127_v27  ;;  %v1593_v57 = vsub.f32 %v2946_v5, %v3127_v27  ;;  %v1596_v10 = vsub.f32 %v2964_v17, %v3127_v27  ;;  %v1393_v15 = vpop.f32.mrf.mxu0 }
 0x3e1   :  { %v1510_v4 = vmax.f32 %v1508_v51, %v3119_v59  ;;  %v1511_v6 = vmax.f32 %v1509_v38, %v3125_v20  ;;  %v3155_v5 = vadd.f32 %v1379_v33, %v2982_v19  ;;  %v1599_v63 = vsub.f32 %v2977_v28, %v3127_v27 }
 0x3e2   :  { %v1532_v17 = vmax.f32 %v1530_v48, %v3133_v0  ;;  %v1395_v26 = vpop.f32.mrf.mxu0  ;;  %v1602_v47 = vsub.f32 %v2991_v35, %v3127_v27  ;;  %v1637_v42 = vmul.f32 1.442695, %v1587_v9  ;;  %v1643_v51 = vmul.f32 1.442695, %v1590_v44 }
 0x3e3   :  { %v1649_v62 = vmul.f32 1.442695, %v1593_v57  ;;  %v1655_v33 = vmul.f32 1.442695, %v1596_v10  ;;  %v1512_v38 = vmax.f32 %v1510_v4, %v3146_v12  ;;  %v1533_v28 = vmax.f32 %v1531_v32, %v3149_v14 }
 0x3e4   :  { %v3171_v48 = vadd.f32 %v1385_v3, %v2998_v39  ;;  %v1399_v19 = vpop.f32.mrf.mxu0  ;;  %v1605_v43 = vsub.f32 %v2980_v29, %v3127_v27  ;;  %2327 = vpow2.f32 %v1637_v42  ;;  %v1513_v11 = vmax.f32 %v1511_v6, %v3155_v5 }
 0x3e5   :  { %v3177_v35 = vadd.f32 %v1389_v52, %v3004_v45  ;;  %2329 = vpow2.f32 %v1643_v51  ;;  %v1661_v9 = vmul.f32 1.442695, %v1599_v63  ;;  %v1534_v44 = vmax.f32 %v1532_v17, %v3161_v25 }
 0x3e6   :  { %v1514_v57 = vmax.f32 %v1512_v38, %v3164_v16  ;;  %v1401_v10 = vpop.f32.mrf.mxu0  ;;  %v1608_v39 = vsub.f32 %v2996_v31, %v3127_v27  ;;  %2331 = vpow2.f32 %v1649_v62  ;;  %v1667_v3 = vmul.f32 1.442695, %v1602_v47 }
 0x3e7   :  { %v3184_v29 = vadd.f32 %v1391_v22, %v3004_v45  ;;  %v1611_v4 = vsub.f32 %v3011_v49, %v3127_v27  ;;  %2333 = vpow2.f32 %v1655_v33  ;;  %v1535_v52 = vmax.f32 %v1533_v28, %v3171_v48 }
 0x3e8   :  { %v3190_v32 = vadd.f32 %v1393_v15, %v3018_v36  ;;  %v1403_v6 = vpop.f32.mrf.mxu0  ;;  %v1673_v63 = vmul.f32 1.442695, %v1605_v43  ;;  %v1515_v17 = vmax.f32 %v1513_v11, %v3177_v35  ;;  %v3194_v31 = vadd.f32 %v1395_v26, %v3018_v36 }
 0x3e9   :  { %v3197_v47 = vadd.f32 %v1399_v19, %v3028_v13  ;;  %2335 = vpow2.f32 %v1661_v9  ;;  %v3201_v49 = vadd.f32 %v1401_v10, %v3028_v13  ;;  %v3204_v22 = vadd.f32 %v1403_v6, %v3040_v34 }
 0x3ea   :  { %v1516_v45 = vmax.f32 %v1514_v57, %v3190_v32  ;;  %v1405_v15 = vpop.f32.mrf.mxu0  ;;  %v1614_v42 = vsub.f32 %v3021_v55, %v3127_v27  ;;  %2337 = vpow2.f32 %v1667_v3  ;;  %v1679_v51 = vmul.f32 1.442695, %v1608_v39 }
 0x3eb   :  { %v1536_v36 = vmax.f32 %v1534_v44, %v3184_v29  ;;  %v1537_v26 = vmax.f32 %v1535_v52, %v3194_v31  ;;  %v1517_v62 = vmax.f32 %v1515_v17, %v3197_v47  ;;  %v3213_v13 = vadd.f32 %v1405_v15, %v3040_v34 }
 0x3ec   :  { %v1518_v33 = vmax.f32 %v1516_v45, %v3204_v22  ;;  %v1617_v38 = vsub.f32 %v3014_v50, %v3127_v27  ;;  %v1685_v28 = vmul.f32 1.442695, %v1611_v4  ;;  %2339 = vpow2.f32 %v1673_v63  ;;  %v3610_v4 = vld [vmem:[#allocation7_spill] sm:$0xff] }
 0x3ed   :  { %v1538_v55 = vmax.f32 %v1536_v36, %v3201_v49  ;;  %v1539_v43 = vmax.f32 %v1537_v26, %v3213_v13  ;;  %v1620_v11 = vsub.f32 %v3026_v8, %v3127_v27  ;;  %2341 = vpow2.f32 %v1679_v51 }
 0x3ee   :  { %v1519_v19 = vmax.f32 %v1517_v62, %v1518_v33  ;;  %v1691_v9 = vmul.f32 1.442695, %v1614_v42  ;;  %v1623_v34 = vsub.f32 %v3035_v30, %v3127_v27  ;;  %2343 = vpow2.f32 %v1685_v28  ;;  %v3611_v42 = vld [vmem:[#allocation6_spill] sm:$0xff] }
 0x3ef   :  { %v1540_v57 = vmax.f32 %v1538_v55, %v1539_v43  ;;  %v1697_v50 = vmul.f32 1.442695, %v1617_v38  ;;  %v1626_v52 = vsub.f32 %v3610_v4, %v3127_v27  ;;  %v1703_v6 = vmul.f32 1.442695, %v1620_v11 }
 0x3f0   :  { %v1520_v44 = vrot.slane %v1519_v19, 4  ;;  %2345 = vpow2.f32 %v1691_v9  ;;  %v1629_v51 = vsub.f32 %v3611_v42, %v3127_v27  ;;  %v1709_v26 = vmul.f32 1.442695, %v1623_v34 }
 0x3f1   :  { %v3221_v10 = vpop.eup %2327  ;;  %v1541_v30 = vrot.slane %v1540_v57, 4  ;;  %2347 = vpow2.f32 %v1697_v50  ;;  %v1632_v28 = vsub.f32 %v3050_v53, %v3127_v27  ;;  %v1715_v55 = vmul.f32 1.442695, %v1626_v52 }
 0x3f2   :  { %v1521_v39 = vmax.f32 %v1519_v19, %v1520_v44  ;;  %v3225_v3 = vpop.eup %2329  ;;  %v1771_v8 = vsel %vm1547_vm9, %v3221_v10, 0.0  ;;  %2349 = vpow2.f32 %v1703_v6  ;;  %v1721_v50 = vmul.f32 1.442695, %v1629_v51 }
 0x3f3   :  { %v3231_v63 = vpop.eup %2331  ;;  %v1772_v17 = vsel %vm1547_vm9, %v3225_v3, 0.0  ;;  %v1542_v44 = vmax.f32 %v1540_v57, %v1541_v30  ;;  %2351 = vpow2.f32 %v1709_v26  ;;  %v1727_v27 = vmul.f32 1.442695, %v1632_v28 }
 0x3f4   :  { %v1522_v45 = vrot.slane %v1521_v39, 2  ;;  %v3235_v15 = vpop.eup %2333  ;;  %v1773_v36 = vadd.f32 %v1772_v17, %v1771_v8  ;;  %v1774_v62 = vsel %vm1547_vm9, %v3231_v63, 0.0  ;;  %2353 = vpow2.f32 %v1715_v55 }
 0x3f5   :  { %v1776_v11 = vsel %vm1547_vm9, %v3235_v15, 0.0  ;;  %v1543_v6 = vrot.slane %v1542_v44, 2  ;;  %2355 = vpow2.f32 %v1721_v50 }
 0x3f6   :  { %v1523_v33 = vmax.f32 %v1521_v39, %v1522_v45  ;;  %v3241_v38 = vpop.eup %2335  ;;  %v1775_v19 = vadd.f32 %v1774_v62, %v1773_v36  ;;  %2357 = vpow2.f32 %v1727_v27 }
 0x3f7   :  { %v3245_v43 = vpop.eup %2337  ;;  %v1778_v39 = vsel %vm1547_vm9, %v3241_v38, 0.0 }
 0x3f8   :  { %v1524_v9 = vrot.slane %v1523_v33, 1  ;;  %v1777_v34 = vadd.f32 %v1776_v11, %v1775_v19  ;;  %v1780_v52 = vsel %vm1547_vm9, %v3245_v43, 0.0 }
 0x3f9   :  { %v3253_v8 = vpop.eup %2339 }
 0x3fa   :  { %v3251_v4 = vmax.f32 %v1523_v33, %v1524_v9  ;;  %v1779_v53 = vadd.f32 %v1778_v39, %v1777_v34  ;;  %v3257_v17 = vpop.eup %2341  ;;  %v1782_v45 = vsel %vm1547_vm9, %v3253_v8, 0.0  ;;  %v1544_v33 = vmax.f32 %v1542_v44, %v1543_v6 }
 0x3fb   :  { %v3265_v51 = vpop.eup %2343  ;;  %v1784_v62 = vsel %vm1547_vm9, %v3257_v17, 0.0 }
 0x3fc   :  { %v1781_v57 = vadd.f32 %v1780_v52, %v1779_v53  ;;  %v1585_v30 = vsub.f32 %v3067_v56, %v3251_v4  ;;  %v1588_v42 = vsub.f32 %v3087_v1, %v3251_v4  ;;  %v1591_v26 = vsub.f32 %v3059_v46, %v3251_v4 }
 0x3fd   :  { %v3271_v28 = vpop.eup %2345  ;;  %v1594_v56 = vsub.f32 %v3071_v58, %v3251_v4  ;;  %v1786_v1 = vsel %vm1547_vm9, %v3265_v51, 0.0  ;;  %v1597_v46 = vsub.f32 %v3079_v21, %v3251_v4  ;;  %v1600_v39 = vsub.f32 %v3100_v41, %v3251_v4 }
 0x3fe   :  { %v1783_v36 = vadd.f32 %v1782_v45, %v1781_v57  ;;  %v1633_v19 = vmul.f32 1.442695, %v1585_v30  ;;  %v1639_v11 = vmul.f32 1.442695, %v1588_v42  ;;  %v3277_v9 = vpop.eup %2347  ;;  %v1645_v50 = vmul.f32 1.442695, %v1591_v26 }
 0x3ff   :  { %v1788_v44 = vsel %vm1547_vm9, %v3271_v28, 0.0  ;;  %v1545_v58 = vrot.slane %v1544_v33, 1  ;;  %v3285_v53 = vpop.eup %2349  ;;  %v1603_v52 = vsub.f32 %v3108_v61, %v3251_v4  ;;  %v1651_v6 = vmul.f32 1.442695, %v1594_v56 }
 0x400   :  { %v1785_v55 = vadd.f32 %v1784_v62, %v1783_v36  ;;  %2359 = vpow2.f32 %v1633_v19  ;;  %v1790_v21 = vsel %vm1547_vm9, %v3277_v9, 0.0  ;;  %v1606_v57 = vsub.f32 %v3119_v59, %v3251_v4  ;;  %v3293_v45 = vpop.eup %2351 }
 0x401   :  { %2361 = vpow2.f32 %v1639_v11  ;;  %v1609_v41 = vsub.f32 %v3125_v20, %v3251_v4  ;;  %v1657_v42 = vmul.f32 1.442695, %v1597_v46  ;;  %v1792_v36 = vsel %vm1547_vm9, %v3285_v53, 0.0 }
 0x402   :  { %v1787_v34 = vadd.f32 %v1786_v1, %v1785_v55  ;;  %2363 = vpow2.f32 %v1645_v50  ;;  %v1612_v61 = vsub.f32 %v3146_v12, %v3251_v4  ;;  %v1663_v26 = vmul.f32 1.442695, %v1600_v39  ;;  %v3303_v55 = vpop.eup %2353 }
 0x403   :  { %v3301_v62 = vmax.f32 %v1544_v33, %v1545_v58  ;;  %v1615_v56 = vsub.f32 %v3155_v5, %v3251_v4  ;;  %2365 = vpow2.f32 %v1651_v6  ;;  %v1669_v1 = vmul.f32 1.442695, %v1603_v52 }
 0x404   :  { %v1789_v27 = vadd.f32 %v1788_v44, %v1787_v34  ;;  %v1794_v20 = vsel %vm1547_vm9, %v3293_v45, 0.0  ;;  %v1618_v19 = vsub.f32 %v3164_v16, %v3251_v4  ;;  %v1675_v11 = vmul.f32 1.442695, %v1606_v57  ;;  %v3311_v34 = vpop.eup %2355 }
 0x405   :  { %v1621_v33 = vsub.f32 %v3177_v35, %v3251_v4  ;;  %2367 = vpow2.f32 %v1657_v42  ;;  %v1681_v46 = vmul.f32 1.442695, %v1609_v41  ;;  %v1796_v5 = vsel %vm1547_vm9, %v3303_v55, 0.0  ;;  %v3319_v39 = vpop.eup %2357 }
 0x406   :  { %v1791_v30 = vadd.f32 %v1790_v21, %v1789_v27  ;;  %2369 = vpow2.f32 %v1663_v26  ;;  %v1687_v50 = vmul.f32 1.442695, %v1612_v61  ;;  %v1586_v44 = vsub.f32 %v3083_v37, %v3301_v62 }
 0x407   :  { %2371 = vpow2.f32 %v1669_v1  ;;  %v1693_v58 = vmul.f32 1.442695, %v1615_v56  ;;  %v1589_v27 = vsub.f32 %v3091_v18, %v3301_v62  ;;  %v1798_v35 = vsel %vm1547_vm9, %v3311_v34, 0.0 }
 0x408   :  { %v1793_v59 = vadd.f32 %v1792_v36, %v1791_v30  ;;  %v1624_v52 = vsub.f32 %v3190_v32, %v3251_v4  ;;  %2373 = vpow2.f32 %v1675_v11  ;;  %v1699_v6 = vmul.f32 1.442695, %v1618_v19 }
 0x409   :  { %2375 = vpow2.f32 %v1681_v46  ;;  %v1705_v57 = vmul.f32 1.442695, %v1621_v33  ;;  %v1592_v37 = vsub.f32 %v3063_v40, %v3301_v62  ;;  %v1800_v30 = vsel %vm1547_vm9, %v3319_v39, 0.0 }
 0x40a   :  { %v1795_v12 = vadd.f32 %v1794_v20, %v1793_v59  ;;  %v1627_v18 = vsub.f32 %v3197_v47, %v3251_v4  ;;  %2377 = vpow2.f32 %v1687_v50  ;;  %v1635_v41 = vmul.f32 1.442695, %v1586_v44 }
 0x40b   :  { %2379 = vpow2.f32 %v1693_v58  ;;  %v1595_v32 = vsub.f32 %v3075_v2, %v3301_v62  ;;  %v1641_v61 = vmul.f32 1.442695, %v1589_v27  ;;  %v1711_v40 = vmul.f32 1.442695, %v1624_v52 }
 0x40c   :  { %v1797_v16 = vadd.f32 %v1796_v5, %v1795_v12  ;;  %2381 = vpow2.f32 %v1699_v6  ;;  %v1598_v59 = vsub.f32 %v3097_v24, %v3301_v62  ;;  %v1647_v1 = vmul.f32 1.442695, %v1592_v37 }
 0x40d   :  { %v3333_v42 = vpop.eup %2359  ;;  %2383 = vpow2.f32 %v1705_v57  ;;  %v1630_v19 = vsub.f32 %v3204_v22, %v3251_v4  ;;  %v1717_v2 = vmul.f32 1.442695, %v1627_v18  ;;  %v1601_v11 = vsub.f32 %v3103_v60, %v3301_v62 }
 0x40e   :  { %v1799_v21 = vadd.f32 %v1798_v35, %v1797_v16  ;;  %v3337_v26 = vpop.eup %2361  ;;  %2385 = vpow2.f32 %v1635_v41  ;;  %v1653_v24 = vmul.f32 1.442695, %v1595_v32  ;;  %v1604_v5 = vsub.f32 %v3116_v54, %v3301_v62 }
 0x40f   :  { %v1729_v47 = vadd.f32 %v3337_v26, %v3333_v42  ;;  %v3343_v20 = vpop.eup %2363  ;;  %2387 = vpow2.f32 %v1641_v61  ;;  %v1659_v50 = vmul.f32 1.442695, %v1598_v59  ;;  %v1607_v4 = vsub.f32 %v3122_v23, %v3301_v62 }
 0x410   :  { %v1801_v36 = vadd.f32 %v1800_v30, %v1799_v21  ;;  %v3350_v46 = vpop.eup %2365  ;;  %2389 = vpow2.f32 %v1711_v40  ;;  %v1665_v16 = vmul.f32 1.442695, %v1601_v11  ;;  %v1896_v58 = vlaneseq }
 0x411   :  { %v1730_v33 = vadd.f32 %v3343_v20, %v1729_v47  ;;  %2391 = vpow2.f32 %v1647_v1  ;;  %v1723_v52 = vmul.f32 1.442695, %v1630_v19  ;;  %v1610_v23 = vsub.f32 %v3133_v0, %v3301_v62  ;;  %v2170_v0 = vld.sshfl [vmem:[%s3604_s6] sm:$0x13 pattern:$0x75316420] }
 0x412   :  { %v1802_v56 = vrot.slane %v1801_v36, 4  ;;  %v3357_v60 = vpop.eup %2367  ;;  %2393 = vpow2.f32 %v1717_v2  ;;  %v1671_v21 = vmul.f32 1.442695, %v1604_v5  ;;  %v2459_v18 = vmov 1966171168   ;;  %s2460_s6 = smov [#allocation3]  }
 0x413   :  { %v1731_v22 = vadd.f32 %v3350_v46, %v1730_v33  ;;  %v3359_v27 = vpop.eup %2369  ;;  %2395 = vpow2.f32 %v1653_v24  ;;  %v1894_v41 = vunpack.c.l.s4 %v2459_v18  ;;  %v1613_v61 = vsub.f32 %v3149_v14, %v3301_v62  ;;  %s2025_s10 = sshll.u32 %s2460_s6, 4  ;;  %s2026_s10 = int_to_ptr.vmem [resolvable:$true] %s2025_s10 }
 0x414   :  { %v1803_v12 = vadd.f32 %v1802_v56, %v1801_v36  ;;  %v3363_v54 = vpop.eup %2371  ;;  %2397 = vpow2.f32 %v1659_v50  ;;  %v1897_v36 = vshrl.u32 %v1896_v58, 7  ;;  %v1677_v40 = vmul.f32 1.442695, %v1607_v4  ;;  %s2429_s11 = scalar_lea.vmem %s2026_s10, 32  ;;  %p2434_p1 = scmp.lt.s32.totalorder %s2026_s10, %s2026_s10 }
 0x415   :  { %v1732_v6 = vadd.f32 %v3357_v60, %v1731_v22  ;;  %v3367_v57 = vpop.eup %2373  ;;  %2399 = vpow2.f32 %v1665_v16  ;;  %v1892_v1 = vcombine.high %v2170_v0, %v2170_v0  ;;  %v1895_v19 = vunpack.c.0.s8 %v1894_v41  ;;  %p2430_p0 = scmp.ne.s32.totalorder %s2026_s10, %s2429_s11  ;;  %p2435_p2 = scmp.lt.s32.totalorder %s2429_s11, %s2429_s11 }
 0x416   :  { %v1804_v44 = vrot.slane %v1803_v12, 2  ;;  %v3370_v32 = vpop.eup %2375  ;;  %v1616_v11 = vsub.f32 %v3161_v25, %v3301_v62  ;;  %2401 = vpow2.f32 %v1671_v21  ;;  %v1683_v33 = vmul.f32 1.442695, %v1610_v23 }
 0x417   :  { %v1733_v30 = vadd.f32 %v3359_v27, %v1732_v6  ;;  %v3377_v59 = vpop.eup %2377  ;;  %v1898_v24 = vsub.s32 %v1895_v19, %v1897_v36  ;;  %v1619_v50 = vsub.f32 %v3171_v48, %v3301_v62  ;;  %p2436_p3 = por %p2435_p2, %p2434_p1 }
 0x418   :  { %v1805_v35 = vadd.f32 %v1804_v44, %v1803_v12  ;;  %v3380_v2 = vpop.eup %2379  ;;  %v1689_v44 = vmul.f32 1.442695, %v1613_v61  ;;  %v1695_v23 = vmul.f32 1.442695, %v1616_v11  ;;  %v1631_v61 = vsub.f32 %v3213_v13, %v3301_v62 }
 0x419   :  { %v1734_v47 = vadd.f32 %v3363_v54, %v1733_v30  ;;  %v3384_v14 = vpop.eup %2381  ;;  %v3394_v25 = vrot.slane %v2170_v0, %v1898_v24  ;;  %v1906_v16 = vrot.slane %v1892_v1, %v1898_v24  ;;  %v1628_v30 = vsub.f32 %v3201_v49, %v3301_v62  ;;  %p2437_p4 = pnand %p2436_p3, %p2430_p0 }
 0x41a   :  { %v1806_v37 = vrot.slane %v1805_v35, 1  ;;  %v3387_v5 = vpop.eup %2383 }
 0x41b   :  { %v1735_v12 = vadd.f32 %v3367_v57, %v1734_v47  ;;  %v3391_v22 = vpop.eup %2385  ;;  %1969 = vmatprep.mubr.bf16.mxu0 %v1906_v16  ;;  %v1719_v1 = vmul.f32 1.442695, %v1628_v30 }
 0x41c   :  { %v1807_v56 = vadd.f32 %v1806_v37, %v1805_v35  ;;  %v3396_v58 = vpop.eup %2387  ;;  %v1622_v35 = vsub.f32 %v3184_v29, %v3301_v62 }
 0x41d   :  { %v1736_v4 = vadd.f32 %v3370_v32, %v1735_v12  ;;  %v3402_v6 = vpop.eup %2389  ;;  %v1750_v21 = vadd.f32 %v3396_v58, %v3391_v22 }
 0x41e   :  { %2403 = vrcp.f32 %v1807_v56  ;;  %v3407_v37 = vpop.eup %2391 }
 0x41f   :  { %2405 = vpow2.f32 %v1723_v52  ;;  %v1625_v52 = vsub.f32 %v3194_v31, %v3301_v62  ;;  %v1737_v48 = vadd.f32 %v3377_v59, %v1736_v4  ;;  %v3411_v18 = vpop.eup %2393  ;;  %v1701_v31 = vmul.f32 1.442695, %v1619_v50 }
 0x420   :  { %2407 = vpow2.f32 %v1677_v40  ;;  %v1751_v41 = vadd.f32 %v3407_v37, %v1750_v21  ;;  %v3415_v36 = vpop.eup %2395  ;;  %v1707_v40 = vmul.f32 1.442695, %v1622_v35 }
 0x421   :  { %2409 = vpow2.f32 %v1683_v33  ;;  %v1738_v29 = vadd.f32 %v3380_v2, %v1737_v48  ;;  %v3419_v0 = vpop.eup %2397  ;;  %v1713_v49 = vmul.f32 1.442695, %v1625_v52  ;;  %v1725_v33 = vmul.f32 1.442695, %v1631_v61 }
 0x422   :  { %2411 = vpow2.f32 %v1689_v44  ;;  %v1752_v47 = vadd.f32 %v3415_v36, %v1751_v41  ;;  %v3423_v19 = vpop.eup %2399 }
 0x423   :  { %v1739_v56 = vadd.f32 %v3384_v14, %v1738_v29  ;;  %2413 = vpow2.f32 %v1695_v23  ;;  %v3427_v13 = vpop.eup %2401 }
 0x424   :  { %2415 = vpow2.f32 %v1701_v31  ;;  %v1753_v12 = vadd.f32 %v3419_v0, %v1752_v47 }
 0x425   :  { %v1740_v11 = vadd.f32 %v3387_v5, %v1739_v56  ;;  %2417 = vpow2.f32 %v1707_v40 }
 0x426   :  { %2419 = vpow2.f32 %v1713_v49  ;;  %v1754_v24 = vadd.f32 %v3423_v19, %v1753_v12 }
 0x427   :  { %v1741_v62 = vadd.f32 %v3402_v6, %v1740_v11  ;;  %2421 = vpow2.f32 %v1719_v1 }
 0x428   :  { %v1755_v16 = vadd.f32 %v3427_v13, %v1754_v24  ;;  %2423 = vpow2.f32 %v1725_v33 }
 0x429   :  { %v1742_v4 = vadd.f32 %v3411_v18, %v1741_v62 }
 0x42b   :  { %v3431_v50 = vpop.eup %2403 }
 0x42c   :  { %v3433_v44 = vpop.eup %2405  ;;  %v1855_v35 = vmul.f32 %v3431_v50, %v3311_v34  ;;  %v1858_v52 = vmul.f32 %v3431_v50, %v3319_v39  ;;  %v1849_v23 = vmul.f32 %v3431_v50, %v3293_v45  ;;  %v1843_v21 = vmul.f32 %v3431_v50, %v3277_v9 }
 0x42d   :  { %v3441_v48 = vpop.eup %2407  ;;  %v1846_v30 = vmul.f32 %v3431_v50, %v3285_v53  ;;  %v1743_v29 = vadd.f32 %v3433_v44, %v1742_v4  ;;  %v1837_v39 = vmul.f32 %v3431_v50, %v3265_v51  ;;  %v1852_v61 = vmul.f32 %v3431_v50, %v3303_v55 }
 0x42e   :  { %v1756_v31 = vadd.f32 %v3441_v48, %v1755_v16  ;;  %v1882_v34 = vpack.c.bf16 %v1858_v52, %v1855_v35  ;;  %v3453_v41 = vpop.eup %2409  ;;  %v1840_v9 = vmul.f32 %v3431_v50, %v3271_v28  ;;  %v3461_v53 = vmul.f32 %v3431_v50, %v3253_v8 }
 0x42f   :  { %v1876_v45 = vpack.c.bf16 %v1846_v30, %v1843_v21  ;;  %v1744_v40 = vrot.slane %v1743_v29, 4  ;;  %v3467_v51 = vmul.f32 %v3431_v50, %v3257_v17  ;;  %v3469_v47 = vpop.eup %2411  ;;  %v3473_v28 = vmul.f32 %v3431_v50, %v3241_v38 }
 0x430   :  { %v1757_v56 = vadd.f32 %v3453_v41, %v1756_v31  ;;  %v1935_v49 = vsel %vm1547_vm9, %v1882_v34, 0  ;;  %v1873_v55 = vpack.c.bf16 %v1840_v9, %v1837_v39  ;;  %v3481_v17 = vmul.f32 %v3431_v50, %v3245_v43  ;;  %v3483_v12 = vpop.eup %2413 }
 0x431   :  { %2213 = vmatpush3.bf16.xpose.msra.mxu1 %v1935_v49  ;;  %v1745_v1 = vadd.f32 %v1744_v40, %v1743_v29  ;;  %v1870_v11 = vpack.c.bf16 %v3467_v51, %v3461_v53  ;;  %v3487_v33 = vmul.f32 %v3431_v50, %v3231_v63  ;;  %v3491_v38 = vmul.f32 %v3431_v50, %v3235_v15  ;;  %v3496_v35 = vpop.eup %2415 }
 0x432   :  { %v1758_v8 = vadd.f32 %v3469_v47, %v1757_v56  ;;  %2214 = vmatprep.subr.bf16.mxu1 %v2457_v7  ;;  %v1879_v4 = vpack.c.bf16 %v1852_v61, %v1849_v23  ;;  %v1867_v16 = vpack.c.bf16 %v3481_v17, %v3473_v28  ;;  %v2418_v52 = vpop.eup %2417  ;;  %v1929_v56 = vsel %vm1547_vm9, %v1876_v45, 0 }
 0x433   :  { %v1746_v62 = vrot.slane %v1745_v1, 2  ;;  %v1864_v43 = vpack.c.bf16 %v3491_v38, %v3487_v33  ;;  %v2420_v30 = vpop.eup %2419 }
 0x434   :  { %v1759_v24 = vadd.f32 %v3483_v12, %v1758_v8  ;;  %v2422_v29 = vpop.eup %2421  ;;  %v1932_v34 = vsel %vm1547_vm9, %v1879_v4, 0  ;;  %v1926_v8 = vsel %vm1547_vm9, %v1873_v55, 0 }
 0x435   :  { %v1747_v21 = vadd.f32 %v1746_v62, %v1745_v1  ;;  %v2424_v23 = vpop.eup %2423 }
 0x436   :  { %v1760_v63 = vadd.f32 %v3496_v35, %v1759_v24 }
 0x437   :  { %v1748_v15 = vrot.slane %v1747_v21, 1 }
 0x438   :  { %v1761_v31 = vadd.f32 %v2418_v52, %v1760_v63 }
 0x439   :  { %2215 = vmatpush3.bf16.xpose.msra.mxu1 %v1932_v34  ;;  %v1749_v39 = vadd.f32 %v1748_v15, %v1747_v21  ;;  %v1923_v34 = vsel %vm1547_vm9, %v1870_v11, 0 }
 0x43a   :  { %v1762_v61 = vadd.f32 %v2420_v30, %v1761_v31  ;;  %2216 = vmatprep.subr.bf16.mxu1 %v2457_v7 }
 0x43b   :  { %2425 = vrcp.f32 %v1749_v39 }
 0x43c   :  { %v1763_v9 = vadd.f32 %v2422_v29, %v1762_v61 }
 0x43e   :  { %v1764_v53 = vadd.f32 %v2424_v23, %v1763_v9 }
 0x440   :  { %v1765_v40 = vrot.slane %v1764_v53, 4 }
 0x441   :  { %2217 = vmatpush3.bf16.xpose.msra.mxu1 %v1929_v56 }
 0x442   :  { %v1766_v49 = vadd.f32 %v1765_v40, %v1764_v53  ;;  %2218 = vmatprep.subr.bf16.mxu1 %v2457_v7 }
 0x444   :  { %v1767_v51 = vrot.slane %v1766_v49, 2 }
 0x446   :  { %v1768_v28 = vadd.f32 %v1767_v51, %v1766_v49 }
 0x448   :  { %v1769_v1 = vrot.slane %v1768_v28, 1  ;;  %v2426_v17 = vpop.eup %2425 }
 0x449   :  { %2219 = vmatpush3.bf16.xpose.msra.mxu1 %v1926_v8  ;;  %v3508_v24 = vmul.f32 %v2426_v17, %v3380_v2  ;;  %v3511_v4 = vmul.f32 %v2426_v17, %v3384_v14  ;;  %v3514_v45 = vmul.f32 %v2426_v17, %v3370_v32  ;;  %v3517_v21 = vmul.f32 %v2426_v17, %v3377_v59 }
 0x44a   :  { %v1770_v62 = vadd.f32 %v1769_v1, %v1768_v28  ;;  %2220 = vmatprep.subr.bf16.mxu1 %v2457_v7  ;;  %v3520_v55 = vmul.f32 %v2426_v17, %v3363_v54  ;;  %v3525_v15 = vmul.f32 %v2426_v17, %v3367_v57  ;;  %v3528_v2 = vmul.f32 %v2426_v17, %v3357_v60 }
 0x44b   :  { %v1874_v63 = vpack.c.bf16 %v3511_v4, %v3508_v24  ;;  %v1871_v32 = vpack.c.bf16 %v3517_v21, %v3514_v45  ;;  %v3533_v14 = vmul.f32 %v2426_v17, %v3359_v27  ;;  %v3536_v59 = vmul.f32 %v2426_v17, %v3343_v20 }
 0x44c   :  { %2427 = vrcp.f32 %v1770_v62  ;;  %v3539_v54 = vmul.f32 %v2426_v17, %v3350_v46  ;;  %v1868_v31 = vpack.c.bf16 %v3525_v15, %v3520_v55  ;;  %v3544_v57 = vmul.f32 %v2426_v17, %v3333_v42 }
 0x44d   :  { %v3547_v60 = vmul.f32 %v2426_v17, %v3337_v26  ;;  %v1865_v27 = vpack.c.bf16 %v3533_v14, %v3528_v2  ;;  %v1853_v42 = vmul.f32 %v2426_v17, %v3411_v18  ;;  %v1856_v39 = vmul.f32 %v2426_v17, %v3433_v44 }
 0x44e   :  { %v1862_v20 = vpack.c.bf16 %v3539_v54, %v3536_v59  ;;  %v1920_v26 = vsel %vm1547_vm9, %v1867_v16, 0 }
 0x44f   :  { %v1859_v46 = vpack.c.bf16 %v3547_v60, %v3544_v57  ;;  %v1880_v28 = vpack.c.bf16 %v1856_v39, %v1853_v42 }
 0x451   :  { %2221 = vmatpush3.bf16.xpose.msra.mxu1 %v1923_v34 }
 0x452   :  { %2222 = vmatprep.subr.bf16.mxu1 %v2457_v7 }
 0x459   :  { %v2428_v61 = vpop.eup %2427  ;;  %2223 = vmatpush3.bf16.xpose.msra.mxu1 %v1920_v26 }
 0x45a   :  { %v1854_v11 = vmul.f32 %v2428_v61, %v2422_v29  ;;  %v1857_v9 = vmul.f32 %v2428_v61, %v2424_v23  ;;  %v1848_v53 = vmul.f32 %v2428_v61, %v2418_v52  ;;  %v1851_v40 = vmul.f32 %v2428_v61, %v2420_v30  ;;  %2224 = vmatprep.subr.bf16.mxu1 %v2457_v7 }
 0x45b   :  { %v1836_v56 = vmul.f32 %v2428_v61, %v3453_v41  ;;  %v1839_v49 = vmul.f32 %v2428_v61, %v3469_v47  ;;  %v1830_v18 = vmul.f32 %v2428_v61, %v3427_v13  ;;  %v1833_v44 = vmul.f32 %v2428_v61, %v3441_v48 }
 0x45c   :  { %v1881_v51 = vpack.c.bf16 %v1857_v9, %v1854_v11  ;;  %v1878_v1 = vpack.c.bf16 %v1851_v40, %v1848_v53  ;;  %v1824_v8 = vmul.f32 %v2428_v61, %v3419_v0  ;;  %v1827_v29 = vmul.f32 %v2428_v61, %v3423_v19 }
 0x45d   :  { %v1872_v16 = vpack.c.bf16 %v1839_v49, %v1836_v56  ;;  %v1869_v52 = vpack.c.bf16 %v1833_v44, %v1830_v18  ;;  %v1818_v30 = vmul.f32 %v2428_v61, %v3407_v37  ;;  %v1821_v41 = vmul.f32 %v2428_v61, %v3415_v36 }
 0x45e   :  { %1937 = vmatprep.subr.bf16.mxu0 %v1881_v51  ;;  %v1812_v47 = vmul.f32 %v2428_v61, %v3391_v22  ;;  %v1866_v23 = vpack.c.bf16 %v1827_v29, %v1824_v8  ;;  %v1815_v13 = vmul.f32 %v2428_v61, %v3396_v58  ;;  %v1917_v0 = vsel %vm1547_vm9, %v1864_v43, 0 }
 0x45f   :  { %1938 = vmatpush1.bf16.xpose.msra.mxu0 %v1880_v28  ;;  %v1813_v19 = vmul.f32 %v3431_v50, %v3221_v10  ;;  %v1816_v37 = vmul.f32 %v3431_v50, %v3225_v3  ;;  %v1863_v48 = vpack.c.bf16 %v1821_v41, %v1818_v30  ;;  %v1847_v36 = vmul.f32 %v2426_v17, %v3387_v5 }
 0x460   :  { %1939 = vmatprep.subr.bf16.mxu0 %v1878_v1  ;;  %v1850_v22 = vmul.f32 %v2426_v17, %v3402_v6  ;;  %v1860_v62 = vpack.c.bf16 %v1815_v13, %v1812_v47  ;;  %v1842_v58 = vmul.f32 %v2428_v61, %v3483_v12  ;;  %v1845_v55 = vmul.f32 %v2428_v61, %v3496_v35 }
 0x461   :  { %2225 = vmatpush3.bf16.xpose.msra.mxu1 %v1917_v0  ;;  %v1861_v33 = vpack.c.bf16 %v1816_v37, %v1813_v19  ;;  %v1907_v3 = vcombine.high %v3394_v25, %v3394_v25 }
 0x462   :  { %2226 = vmatprep.subr.bf16.mxu1 %v2457_v7  ;;  %v1877_v38 = vpack.c.bf16 %v1850_v22, %v1847_v36  ;;  %v1875_v43 = vpack.c.bf16 %v1845_v55, %v1842_v58 }
 0x463   :  { %v1914_v10 = vsel %vm1547_vm9, %v1861_v33, 0 }
 0x467   :  { %1940 = vmatpush1.bf16.xpose.msra.mxu0 %v1877_v38 }
 0x468   :  { %1941 = vmatprep.subr.bf16.mxu0 %v1875_v43 }
 0x469   :  { %2227 = vmatpush3.bf16.xpose.msra.mxu1 %v1914_v10 }
 0x46f   :  { %1942 = vmatpush1.bf16.xpose.msra.mxu0 %v1874_v63 }
 0x470   :  { %1943 = vmatprep.subr.bf16.mxu0 %v1872_v16  ;;  %2229 = vmatmul.mubr.msk.bf16.vlgmr.msra.gmra.mxu1 %vm1547_vm9, %v1907_v3 }
 0x477   :  { %1944 = vmatpush1.bf16.xpose.msra.mxu0 %v1871_v32 }
 0x478   :  { %1945 = vmatprep.subr.bf16.mxu0 %v1869_v52 }
 0x47f   :  { %1946 = vmatpush1.bf16.xpose.msra.mxu0 %v1868_v31 }
 0x480   :  { %1947 = vmatprep.subr.bf16.mxu0 %v1866_v23 }
 0x487   :  { %1948 = vmatpush1.bf16.xpose.msra.mxu0 %v1865_v27 }
 0x488   :  { %1949 = vmatprep.subr.bf16.mxu0 %v1863_v48 }
 0x48f   :  { %1950 = vmatpush1.bf16.xpose.msra.mxu0 %v1862_v20 }
 0x490   :  { %1951 = vmatprep.subr.bf16.mxu0 %v1860_v62 }
 0x497   :  { %1952 = vmatpush1.bf16.xpose.msra.mxu0 %v1859_v46 }
 0x49e   :  { %1970 = vmatmul.mubr.bf16.vlgmr.msra.gmra.mxu0 %v3394_v25 }
 0x530   :  { %v2011_v7 = vpop.f32.mrf.mxu1 }
 0x532   :  { %v2230_v5 = vpop.f32.mrf.mxu1 }
 0x534   :  { %v2014_v6 = vpop.f32.mrf.mxu1 }
 0x536   :  { %v2231_v50 = vpop.f32.mrf.mxu1 }
 0x55e   :  { %v1971_v12 = vpop.f32.mrf.mxu0 }
 0x55f   :  { %v2012_v35 = vadd.f32 %v2011_v7, %v1971_v12 }
 0x560   :  { %v1973_v17 = vpop.f32.mrf.mxu0 }
 0x561   :  { %v2017_v24 = vmul.f32 0.006802721, %v2012_v35 }
 0x562   :  { %v1974_v4 = vpop.f32.mrf.mxu0 }
 0x563   :  { %2018 = vst [vmem:[#allocation3] sm:$0x3] %v2017_v24 }
 0x564   :  { %v1975_v45 = vpop.f32.mrf.mxu0 }
 0x565   :  { %2440 = shalt.err (!%p2437_p4)
}
 0x566   :  { %2028 = dma.vmem_to_hbm [thread:$0]  %s2026_s10, 32, %s3605_s7, [#allocation4]  }
 0x567   :  { %2449 = dma.done.wait [#allocation4], 32  }
 0x568   :  { %2450 = vsyncadd [#allocation4], 4294967264 }
 0x569   :  { %2032 = vsyncpa [#allocation4], 1 }

</bundles_post_ra>
